<compile_context>
chip_gen: v5e
topology: v5e:2x2
jax: 0.10.0
libtpu: 0.0.40
codegen_flags: <defaults>
</compile_context>

<pallas_src>
import jax
import jax.numpy as jnp
from jax.experimental import pallas as pl
from jax.experimental.pallas import tpu as pltpu

# ------------------------- model dimensions (small) -------------------------
B = 1          # batch
C_LAT = 4      # latent channels
F = 4          # video frames
H = 8          # latent height
W = 8          # latent width
HW = H * W
ROWS = F * HW  # 256 rows processed in one kernel invocation
C_CTRL = 3     # motion-sequence (pose) channels
D = 32         # UNet hidden width
D_FF = 128     # feed-forward width
T_PROMPT = 8   # image-prompt tokens
IMG_HW = 16    # source image / motion sequence spatial size

K_CONV = C_LAT * 9 + C_CTRL * 9   # 63 (fused conv_in + controlnet patch width)
K_CONV_PAD = 64                   # padded to a multiple of 8 for the GEMM

# Row offsets of each weight inside the packed (296, 128) weight slab.
# All offsets are multiples of 8 -> sublane-aligned ref slices.
_W_CONV = (0, 64)      # (64, D)    fused conv_in + controlnet weight (row 63 zero)
_W_QK   = (64, 96)     # (D, T)     W_q*scale @ K^T   (folded query/key proj)
_V_O    = (96, 104)    # (T, D)     V @ W_o           (folded value/output proj)
_W_FF1  = (104, 136)   # (D, D_FF)  feed-forward up
_W_FF2  = (136, 264)   # (D_FF, D)  feed-forward down
_W_OUT  = (264, 296)   # (D, 128)   1x1 conv_out, zero-padded to 128 lanes
W_SLAB_ROWS = 296

# Row index of each bias inside the packed (8, 128) bias slab.
_B_CONV, _B_FF1, _B_FF2, _B_OUT = 0, 1, 2, 3
B_SLAB_ROWS = 8


# ------------------------------ Pallas kernel -------------------------------
def unet_step_kernel(x_ref, w_ref, b_ref, out_ref):
    """x_ref:  (ROWS, 64)   fused im2col rows (latent 36 | control 27 | pad 1)
       w_ref:  (296, 128)   packed weight slab (prompt K/V already folded in)
       b_ref:  (8, 128)     packed bias slab (row 0 already includes time+app cond)
       out_ref:(ROWS, 128)  lane-dense output; channels 0:4 are the noise pred
    """
    f32 = jnp.float32

    # Fused conv_in + ControlNet 3x3 conv (single GEMM); bias row already
    # carries b_cin + b_ctl + timestep-MLP + appearance conditioning.
    x = x_ref[...]                                                   # (ROWS, 64)
    w_conv = w_ref[_W_CONV[0]:_W_CONV[1], 0:D]                       # (64, D)
    h = jnp.dot(x, w_conv, preferred_element_type=f32) + b_ref[_B_CONV:_B_CONV + 1, 0:D]

    # Cross-attention against image-prompt tokens.  Q/K and V/O projections
    # were folded in the wrapper, so only two small matmuls remain here.
    w_qk = w_ref[_W_QK[0]:_W_QK[1], 0:T_PROMPT]                      # (D, T)
    v_o = w_ref[_V_O[0]:_V_O[1], 0:D]                                # (T, D)
    s = jnp.dot(h, w_qk, preferred_element_type=f32)                 # (ROWS, T)
    s = s - jnp.max(s, axis=-1, keepdims=True)
    p = jnp.exp(s)
    p = p * pl.reciprocal(jnp.sum(p, axis=-1, keepdims=True), approx=True)
    h = h + jnp.dot(p, v_o, preferred_element_type=f32)              # (ROWS, D)

    # Feed-forward block (GELU).
    w_ff1 = w_ref[_W_FF1[0]:_W_FF1[1], :]                            # (D, D_FF)
    w_ff2 = w_ref[_W_FF2[0]:_W_FF2[1], 0:D]                          # (D_FF, D)
    ff = jnp.dot(h, w_ff1, preferred_element_type=f32) + b_ref[_B_FF1:_B_FF1 + 1, :]
    ff = jax.nn.gelu(ff, approximate=True)
    h = h + jnp.dot(ff, w_ff2, preferred_element_type=f32) + b_ref[_B_FF2:_B_FF2 + 1, 0:D]

    # conv_out (1x1) padded to 128 result lanes -> unmasked lane-dense stores.
    w_out = w_ref[_W_OUT[0]:_W_OUT[1], :]                            # (D, 128)
    out_ref[...] = jnp.dot(h, w_out, preferred_element_type=f32) + b_ref[_B_OUT:_B_OUT + 1, :]


# ------------------------------- glue helpers --------------------------------
def im2col_3x3(x_nchw):
    """(N, C, H, W) -> (N*H*W, C*9) with 'same' zero padding."""
    n, c, hh, ww = x_nchw.shape
    xp = jnp.pad(x_nchw, ((0, 0), (0, 0), (1, 1), (1, 1)))
    cols = [xp[:, :, di:di + hh, dj:dj + ww] for di in range(3) for dj in range(3)]
    patches = jnp.stack(cols, axis=0)                  # (9, N, C, H, W)
    patches = patches.transpose(1, 3, 4, 2, 0)         # (N, H, W, C, 9)
    return patches.reshape(n * hh * ww, c * 9)


def sinusoidal_timestep_embedding(timestep, dim):
    half = dim // 2
    freqs = jnp.exp(-jnp.log(10000.0) * jnp.arange(half, dtype=jnp.float32) / half)
    args = jnp.asarray(timestep, jnp.float32) * freqs
    return jnp.concatenate([jnp.sin(args), jnp.cos(args)])[None, :]  # (1, dim)


def _pad_to(a, rows, cols):
    return jnp.pad(a, ((0, rows - a.shape[0]), (0, cols - a.shape[1])))


def _build_inputs(init_latents, image_prompts, timestep, source_image,
                  motion_sequence, params):
    """Shared preprocessing for the kernel wrapper and the pure-JAX reference."""
    # latents: NCFHW -> per-frame NCHW -> im2col rows
    lat_fchw = jnp.transpose(init_latents[0], (1, 0, 2, 3))          # (F, C, H, W)
    lat_rows = im2col_3x3(lat_fchw)                                   # (ROWS, 36)

    # controlnet condition: normalize, NHWC->NCHW, 2x2 avg-pool to latent res
    ctrl = motion_sequence / 255.0
    ctrl = jnp.transpose(ctrl, (0, 3, 1, 2))                          # (F, 3, 16, 16)
    ctrl = ctrl.reshape(F, C_CTRL, H, 2, W, 2).mean(axis=(3, 5))      # (F, 3, 8, 8)
    ctrl_rows = im2col_3x3(ctrl)                                      # (ROWS, 27)

    # Fused conv input rows: [latent patches | control patches | zero pad].
    x_rows = jnp.concatenate([lat_rows, ctrl_rows], axis=-1)          # (ROWS, 63)
    x_rows = jnp.pad(x_rows, ((0, 0), (0, K_CONV_PAD - K_CONV)))      # (ROWS, 64)

    # frame-invariant conditioning (appearance encoder + timestep MLP)
    src_mean = jnp.mean((source_image / 255.0).reshape(-1, 3), axis=0, keepdims=True)
    app = src_mean @ params["w_app"] + params["b_app"]                # (1, D)
    t = sinusoidal_timestep_embedding(timestep, D)                    # (1, D)
    t = t @ params["w_t1"] + params["b_t1"]
    t = t * jax.nn.sigmoid(t)
    t = t @ params["w_t2"] + params["b_t2"]
    cond = app + t                                                    # (1, D)

    prompts = image_prompts[0]                                        # (T, D)
    return x_rows, cond, prompts


def init_params(key):
    names_shapes = [
        ("w_cin", (C_LAT * 9, D)), ("b_cin", (1, D)),
        ("w_ctl", (C_CTRL * 9, D)), ("b_ctl", (1, D)),
        ("w_app", (3, D)), ("b_app", (1, D)),
        ("w_t1", (D, D)), ("b_t1", (1, D)),
        ("w_t2", (D, D)), ("b_t2", (1, D)),
        ("w_q", (D, D)), ("w_k", (D, D)), ("w_v", (D, D)), ("w_o", (D, D)),
        ("w_ff1", (D, D_FF)), ("b_ff1", (1, D_FF)),
        ("w_ff2", (D_FF, D)), ("b_ff2", (1, D)),
        ("w_out", (D, C_LAT)), ("b_out", (1, C_LAT)),
    ]
    keys = jax.random.split(key, len(names_shapes))
    params = {}
    for (name, shape), k in zip(names_shapes, keys):
        if name.startswith("b_"):
            params[name] = jnp.zeros(shape, jnp.float32)
        else:
            params[name] = 0.02 * jax.random.normal(k, shape, jnp.float32)
    return params


# --------------------------------- wrapper -----------------------------------
@jax.jit
def magic_animate_forward(init_latents, image_prompts, timestep,
                          source_image, motion_sequence, params):
    """init_latents: (B, C_LAT, F, H, W) f32   (torch NCFHW convention)
       image_prompts: (B, T_PROMPT, D) f32
       timestep: () int32
       source_image: (IMG_HW, IMG_HW, 3) f32 in [0, 255]
       motion_sequence: (F, IMG_HW, IMG_HW, 3) f32 in [0, 255]
       returns noise_pred: (B, C_LAT, F, H, W) f32
    """
    x_rows, cond, prompts = _build_inputs(init_latents, image_prompts, timestep,
                                          source_image, motion_sequence, params)

    # --- fold the prompt-side attention math into two tiny slab entries
    scale = 1.0 / jnp.sqrt(jnp.asarray(D, jnp.float32))
    k = prompts @ params["w_k"]                                       # (T, D)
    v = prompts @ params["w_v"]                                       # (T, D)
    w_qk = (params["w_q"] * scale) @ k.T                              # (D, T)
    v_o = v @ params["w_o"]                                           # (T, D)

    # --- packed weight slab (296, 128)
    w_conv = jnp.concatenate([params["w_cin"], params["w_ctl"]], axis=0)  # (63, D)
    w_slab = jnp.concatenate([
        _pad_to(w_conv, 64, 128),
        _pad_to(w_qk, 32, 128),
        _pad_to(v_o, 8, 128),
        _pad_to(params["w_ff1"], 32, 128),
        _pad_to(params["w_ff2"], 128, 128),
        _pad_to(params["w_out"], 32, 128),
    ], axis=0)                                                        # (296, 128)

    # --- packed bias slab (8, 128); row 0 also carries the hoisted conditioning.
    b_conv_total = params["b_cin"] + params["b_ctl"] + cond           # (1, D)
    b_slab = jnp.concatenate([
        _pad_to(b_conv_total, 1, 128),
        _pad_to(params["b_ff1"], 1, 128),
        _pad_to(params["b_ff2"], 1, 128),
        _pad_to(params["b_out"], 1, 128),
        jnp.zeros((B_SLAB_ROWS - 4, 128), jnp.float32),
    ], axis=0)                                                        # (8, 128)

    out_pad = pl.pallas_call(
        unet_step_kernel,
        out_shape=jax.ShapeDtypeStruct((ROWS, 128), jnp.float32),
        grid_spec=pltpu.PrefetchScalarGridSpec(
            num_scalar_prefetch=0,
            grid=(1,),                                   # single fused invocation
            in_specs=[
                pl.BlockSpec((ROWS, K_CONV_PAD), lambda i: (0, 0)),
                pl.BlockSpec((W_SLAB_ROWS, 128), lambda i: (0, 0)),
                pl.BlockSpec((B_SLAB_ROWS, 128), lambda i: (0, 0)),
            ],
            out_specs=pl.BlockSpec((ROWS, 128), lambda i: (0, 0)),
        ),
        compiler_params=pltpu.CompilerParams(
            dimension_semantics=("arbitrary",)),
    )(x_rows, w_slab, b_slab)

    # lane-dense (ROWS, 128) -> (ROWS, C_LAT) -> (B, C_LAT, F, H, W)
    out_rows = out_pad[:, :C_LAT]
    noise_pred = out_rows.reshape(F, H, W, C_LAT).transpose(3, 0, 1, 2)[None]
    return noise_pred


# ----------------------------- pure-JAX reference ----------------------------
def reference_forward(init_latents, image_prompts, timestep,
                      source_image, motion_sequence, params):
    """Unfused reference (no weight folding, exact softmax)."""
    x_rows, cond, prompts = _build_inputs(init_latents, image_prompts, timestep,
                                          source_image, motion_sequence, params)
    w_conv = jnp.concatenate([params["w_cin"], params["w_ctl"]], axis=0)  # (63, D)
    h = x_rows[:, :K_CONV] @ w_conv + params["b_cin"] + params["b_ctl"] + cond

    scale = 1.0 / jnp.sqrt(jnp.asarray(D, jnp.float32))
    k = prompts @ params["w_k"]
    v = prompts @ params["w_v"]
    q = h @ params["w_q"]
    p = jax.nn.softmax((q @ k.T) * scale, axis=-1)
    h = h + (p @ v) @ params["w_o"]

    ff = jax.nn.gelu(h @ params["w_ff1"] + params["b_ff1"], approximate=True)
    h = h + ff @ params["w_ff2"] + params["b_ff2"]

    out_rows = h @ params["w_out"] + params["b_out"]                  # (ROWS, 4)
    return out_rows.reshape(F, H, W, C_LAT).transpose(3, 0, 1, 2)[None]


# ----------------------------------- main ------------------------------------
if __name__ == "__main__":
    key = jax.random.PRNGKey(0)
    k_lat, k_prm, k_src, k_mot, k_par = jax.random.split(key, 5)

    init_latents = jax.random.normal(k_lat, (B, C_LAT, F, H, W), jnp.float32)
    image_prompts = jax.random.normal(k_prm, (B, T_PROMPT, D), jnp.float32)
    timestep = jnp.asarray(500, jnp.int32)
    source_image = jax.random.uniform(k_src, (IMG_HW, IMG_HW, 3),
                                      jnp.float32, 0.0, 255.0)
    motion_sequence = jax.random.uniform(k_mot, (F, IMG_HW, IMG_HW, 3),
                                         jnp.float32, 0.0, 255.0)
    random_seed = 42  # TODO(synk): only seeds torch RNG in reference; no numeric effect here.

    params = init_params(k_par)

    noise_pred = magic_animate_forward(init_latents, image_prompts, timestep,
                                       source_image, motion_sequence, params)
    noise_pred = jax.block_until_ready(noise_pred)

    assert noise_pred.shape == (B, C_LAT, F, H, W), noise_pred.shape
    assert bool(jnp.all(jnp.isfinite(noise_pred)))

    ref = reference_forward(init_latents, image_prompts, timestep,
                            source_image, motion_sequence, params)
    assert bool(jnp.allclose(noise_pred, ref, atol=1e-4, rtol=1e-3)), (
        float(jnp.max(jnp.abs(noise_pred - ref))))

    print("KERNEL_OK")
</pallas_src>

<mosaic_0001>
module attributes {stable_mosaic.version = 11 : i64} {
  func.func @unet_step_kernel(%arg0: i32, %arg1: memref<256x64xf32, #tpu.memory_space<vmem>>, %arg2: memref<296x128xf32, #tpu.memory_space<vmem>>, %arg3: memref<8x128xf32, #tpu.memory_space<vmem>>, %arg4: memref<256x128xf32, #tpu.memory_space<vmem>>) attributes {dimension_semantics = [#tpu.dimension_semantics<arbitrary>], iteration_bounds = array<i64: 1>, scalar_prefetch = 0 : i64, scratch_operands = 0 : i64, tpu.core_type = #tpu.core_type<tc>, window_params = [{pipeline_mode = #tpu.pipeline_mode<synchronous>, transform_indices = @transform_0, window_bounds = array<i64: 256, 64>}, {pipeline_mode = #tpu.pipeline_mode<synchronous>, transform_indices = @transform_1, window_bounds = array<i64: 296, 128>}, {pipeline_mode = #tpu.pipeline_mode<synchronous>, transform_indices = @transform_2, window_bounds = array<i64: 8, 128>}, {pipeline_mode = #tpu.pipeline_mode<synchronous>, transform_indices = @transform_3, window_bounds = array<i64: 256, 128>}]} {
    %c0 = arith.constant 0 : index
    %c0_0 = arith.constant 0 : index
    %0 = vector.load %arg1[%c0, %c0_0] : memref<256x64xf32, #tpu.memory_space<vmem>>, vector<256x64xf32>
    %c0_1 = arith.constant 0 : index
    %c0_2 = arith.constant 0 : index
    %1 = vector.load %arg2[%c0_1, %c0_2] : memref<296x128xf32, #tpu.memory_space<vmem>>, vector<64x32xf32>
    %cst = arith.constant dense<0.000000e+00> : vector<256x32xf32>
    %2 = tpu.matmul %0, %1, %cst {dimension_numbers = #tpu.dot_dimension_numbers<[1], [0], [0], [1], [0, 0, 1, 1], [], []>} : vector<256x64xf32>, vector<64x32xf32>, vector<256x32xf32> -> vector<256x32xf32>
    %c0_3 = arith.constant 0 : index
    %c0_4 = arith.constant 0 : index
    %3 = vector.load %arg3[%c0_3, %c0_4] : memref<8x128xf32, #tpu.memory_space<vmem>>, vector<1x32xf32>
    %4 = vector.broadcast %3 : vector<1x32xf32> to vector<256x32xf32>
    %5 = arith.addf %2, %4 : vector<256x32xf32>
    %c64 = arith.constant 64 : index
    %c0_5 = arith.constant 0 : index
    %6 = vector.load %arg2[%c64, %c0_5] : memref<296x128xf32, #tpu.memory_space<vmem>>, vector<32x8xf32>
    %c96 = arith.constant 96 : index
    %c0_6 = arith.constant 0 : index
    %7 = vector.load %arg2[%c96, %c0_6] : memref<296x128xf32, #tpu.memory_space<vmem>>, vector<8x32xf32>
    %cst_7 = arith.constant dense<0.000000e+00> : vector<256x8xf32>
    %8 = tpu.matmul %5, %6, %cst_7 {dimension_numbers = #tpu.dot_dimension_numbers<[1], [0], [0], [1], [0, 0, 1, 1], [], []>} : vector<256x32xf32>, vector<32x8xf32>, vector<256x8xf32> -> vector<256x8xf32>
    %cst_8 = arith.constant dense<0xFF800000> : vector<256xf32>
    %9 = vector.multi_reduction <maximumf>, %8, %cst_8 [1] : vector<256x8xf32> to vector<256xf32>
    %10 = vector.shape_cast %9 : vector<256xf32> to vector<256x1xf32>
    %11 = vector.broadcast %10 : vector<256x1xf32> to vector<256x8xf32>
    %12 = arith.subf %8, %11 : vector<256x8xf32>
    %13 = math.exp %12 : vector<256x8xf32>
    %cst_9 = arith.constant dense<0.000000e+00> : vector<256xf32>
    %14 = vector.multi_reduction <add>, %13, %cst_9 [1] : vector<256x8xf32> to vector<256xf32>
    %15 = vector.shape_cast %14 : vector<256xf32> to vector<256x1xf32>
    %16 = tpu.reciprocal %15 {approx = true} : vector<256x1xf32> -> vector<256x1xf32>
    %17 = vector.broadcast %16 : vector<256x1xf32> to vector<256x8xf32>
    %18 = arith.mulf %13, %17 : vector<256x8xf32>
    %cst_10 = arith.constant dense<0.000000e+00> : vector<256x32xf32>
    %19 = tpu.matmul %18, %7, %cst_10 {dimension_numbers = #tpu.dot_dimension_numbers<[1], [0], [0], [1], [0, 0, 1, 1], [], []>} : vector<256x8xf32>, vector<8x32xf32>, vector<256x32xf32> -> vector<256x32xf32>
    %20 = arith.addf %5, %19 : vector<256x32xf32>
    %c104 = arith.constant 104 : index
    %c0_11 = arith.constant 0 : index
    %21 = vector.load %arg2[%c104, %c0_11] : memref<296x128xf32, #tpu.memory_space<vmem>>, vector<32x128xf32>
    %c136 = arith.constant 136 : index
    %c0_12 = arith.constant 0 : index
    %22 = vector.load %arg2[%c136, %c0_12] : memref<296x128xf32, #tpu.memory_space<vmem>>, vector<128x32xf32>
    %cst_13 = arith.constant dense<0.000000e+00> : vector<256x128xf32>
    %23 = tpu.matmul %20, %21, %cst_13 {dimension_numbers = #tpu.dot_dimension_numbers<[1], [0], [0], [1], [0, 0, 1, 1], [], []>} : vector<256x32xf32>, vector<32x128xf32>, vector<256x128xf32> -> vector<256x128xf32>
    %c1 = arith.constant 1 : index
    %c0_14 = arith.constant 0 : index
    %24 = vector.load %arg3[%c1, %c0_14] : memref<8x128xf32, #tpu.memory_space<vmem>>, vector<1x128xf32>
    %25 = vector.broadcast %24 : vector<1x128xf32> to vector<256x128xf32>
    %26 = arith.addf %23, %25 : vector<256x128xf32>
    %27 = arith.mulf %26, %26 : vector<256x128xf32>
    %28 = arith.mulf %26, %27 : vector<256x128xf32>
    %cst_15 = arith.constant 4.471500e-02 : f32
    %29 = vector.broadcast %cst_15 : f32 to vector<256x128xf32>
    %30 = arith.mulf %29, %28 : vector<256x128xf32>
    %31 = arith.addf %26, %30 : vector<256x128xf32>
    %cst_16 = arith.constant 0.797884583 : f32
    %32 = vector.broadcast %cst_16 : f32 to vector<256x128xf32>
    %33 = arith.mulf %32, %31 : vector<256x128xf32>
    %34 = math.tanh %33 : vector<256x128xf32>
    %cst_17 = arith.constant 1.000000e+00 : f32
    %35 = vector.broadcast %cst_17 : f32 to vector<256x128xf32>
    %36 = arith.addf %35, %34 : vector<256x128xf32>
    %cst_18 = arith.constant 5.000000e-01 : f32
    %37 = vector.broadcast %cst_18 : f32 to vector<256x128xf32>
    %38 = arith.mulf %37, %36 : vector<256x128xf32>
    %39 = arith.mulf %26, %38 : vector<256x128xf32>
    %cst_19 = arith.constant dense<0.000000e+00> : vector<256x32xf32>
    %40 = tpu.matmul %39, %22, %cst_19 {dimension_numbers = #tpu.dot_dimension_numbers<[1], [0], [0], [1], [0, 0, 1, 1], [], []>} : vector<256x128xf32>, vector<128x32xf32>, vector<256x32xf32> -> vector<256x32xf32>
    %41 = arith.addf %20, %40 : vector<256x32xf32>
    %c2 = arith.constant 2 : index
    %c0_20 = arith.constant 0 : index
    %42 = vector.load %arg3[%c2, %c0_20] : memref<8x128xf32, #tpu.memory_space<vmem>>, vector<1x32xf32>
    %43 = vector.broadcast %42 : vector<1x32xf32> to vector<256x32xf32>
    %44 = arith.addf %41, %43 : vector<256x32xf32>
    %c264 = arith.constant 264 : index
    %c0_21 = arith.constant 0 : index
    %45 = vector.load %arg2[%c264, %c0_21] : memref<296x128xf32, #tpu.memory_space<vmem>>, vector<32x128xf32>
    %cst_22 = arith.constant dense<0.000000e+00> : vector<256x128xf32>
    %46 = tpu.matmul %44, %45, %cst_22 {dimension_numbers = #tpu.dot_dimension_numbers<[1], [0], [0], [1], [0, 0, 1, 1], [], []>} : vector<256x32xf32>, vector<32x128xf32>, vector<256x128xf32> -> vector<256x128xf32>
    %c3 = arith.constant 3 : index
    %c0_23 = arith.constant 0 : index
    %47 = vector.load %arg3[%c3, %c0_23] : memref<8x128xf32, #tpu.memory_space<vmem>>, vector<1x128xf32>
    %48 = vector.broadcast %47 : vector<1x128xf32> to vector<256x128xf32>
    %49 = arith.addf %46, %48 : vector<256x128xf32>
    %c0_24 = arith.constant 0 : index
    %c0_25 = arith.constant 0 : index
    %50 = vector.load %arg4[%c0_24, %c0_25] : memref<256x128xf32, #tpu.memory_space<vmem>>, vector<256x128xf32>
    tpu.vector_store %arg4[%c0_24, %c0_25], %49 {strides = array<i32>} : memref<256x128xf32, #tpu.memory_space<vmem>>, vector<256x128xf32>,
    return
  }
  func.func @transform_0(%arg0: i32) -> (i32, i32) {
    %c0_i32 = arith.constant 0 : i32
    %c0_i32_0 = arith.constant 0 : i32
    %c0_i32_1 = arith.constant 0 : i32
    return %c0_i32, %c0_i32_0 : i32, i32
  }
  func.func @transform_1(%arg0: i32) -> (i32, i32) {
    %c0_i32 = arith.constant 0 : i32
    %c0_i32_0 = arith.constant 0 : i32
    %c0_i32_1 = arith.constant 0 : i32
    return %c0_i32, %c0_i32_0 : i32, i32
  }
  func.func @transform_2(%arg0: i32) -> (i32, i32) {
    %c0_i32 = arith.constant 0 : i32
    %c0_i32_0 = arith.constant 0 : i32
    %c0_i32_1 = arith.constant 0 : i32
    return %c0_i32, %c0_i32_0 : i32, i32
  }
  func.func @transform_3(%arg0: i32) -> (i32, i32) {
    %c0_i32 = arith.constant 0 : i32
    %c0_i32_0 = arith.constant 0 : i32
    %c0_i32_1 = arith.constant 0 : i32
    return %c0_i32, %c0_i32_0 : i32, i32
  }
}

</mosaic_0001>

<bundles_post_ra>
// kernel: magic_animate_forward.1
= control target key start
LH: loop header
LB: loop body
LE: loop exit
PB: predicated region body
PF: predicated region fallthrough
CT: control target
= control target key end

     0   :  { %vm56_vm0 = vcmask 523264   ;;  %vm271_vm1 = vcmask 261120   ;;  %vm481_vm2 = vcmask 64512   ;;  %s3769_s1 = inlined_call_operand.vmem [shape: f32[296,128], index: 1, kind: input, shape index: {}]   ;;  %s3770_s2 = inlined_call_operand.vmem [shape: f32[8,128], index: 2, kind: input, shape index: {}]   ;;  %s3771_s0 = inlined_call_operand.vmem [shape: f32[256,64], index: 0, kind: input, shape index: {}]   ;;  %s3772_s3 = inlined_call_operand.vmem [shape: f32[256,128], index: 3, kind: output, shape index: {}]  }
   0x1   :  { %v53_v0 = vld [vmem:[%s3769_s1 + $0x38] sm:$0xff]  ;;  %v52_v1 = vld [vmem:[%s3769_s1 + $0x30] sm:$0xff]  ;;  %v51_v2 = vld [vmem:[%s3769_s1 + $0x28] sm:$0xff] }
   0x2   :  { %161 = vmatpush.msra.mxu0 %v53_v0  ;;  %v50_v3 = vld [vmem:[%s3769_s1 + $0x20] sm:$0xff]  ;;  %v49_v4 = vld [vmem:[%s3769_s1 + $0x18] sm:$0xff]  ;;  %v48_v5 = vld [vmem:[%s3769_s1 + $0x10] sm:$0xff] }
   0x3   :  { %v47_v6 = vld [vmem:[%s3769_s1 + $0x8] sm:$0xff]  ;;  %v46_v7 = vld [vmem:[%s3769_s1] sm:$0xff]  ;;  %v16_v10 = vld [vmem:[%s3771_s0 + $0x10] sm:$0xff] }
   0x4   :  { %162 = vmatpush.msra.mxu0 %v52_v1  ;;  %v14_v8 = vld [vmem:[%s3771_s0] sm:$0xff]  ;;  %v15_v9 = vld [vmem:[%s3771_s0 + $0x8] sm:$0xff]  ;;  %v17_v11 = vld [vmem:[%s3771_s0 + $0x18] sm:$0xff] }
   0x5   :  { %v269_v12 = vld [vmem:[%s3769_s1 + $0x58] sm:$0xff]  ;;  %v18_v13 = vld [vmem:[%s3771_s0 + $0x20] sm:$0xff]  ;;  %v268_v14 = vld [vmem:[%s3769_s1 + $0x50] sm:$0xff] }
   0x6   :  { %163 = vmatpush.msra.mxu0 %v51_v2  ;;  %380 = vmatpush.msra.mxu1 %v269_v12  ;;  %v19_v15 = vld [vmem:[%s3771_s0 + $0x28] sm:$0xff]  ;;  %v20_v16 = vld [vmem:[%s3771_s0 + $0x30] sm:$0xff]  ;;  %v21_v17 = vld [vmem:[%s3771_s0 + $0x38] sm:$0xff] }
   0x7   :  { %2184 = vmatpush.msra.mxu3 %v269_v12  ;;  %v22_v18 = vld [vmem:[%s3771_s0 + $0x40] sm:$0xff]  ;;  %v267_v19 = vld [vmem:[%s3769_s1 + $0x48] sm:$0xff]  ;;  %v24_v22 = vld [vmem:[%s3771_s0 + $0x50] sm:$0xff] }
   0x8   :  { %164 = vmatpush.msra.mxu0 %v50_v3  ;;  %381 = vmatpush.msra.mxu1 %v268_v14  ;;  %v266_v20 = vld [vmem:[%s3769_s1 + $0x40] sm:$0xff]  ;;  %v23_v21 = vld [vmem:[%s3771_s0 + $0x48] sm:$0xff]  ;;  %v25_v23 = vld [vmem:[%s3771_s0 + $0x58] sm:$0xff] }
   0x9   :  { %2185 = vmatpush.msra.mxu3 %v268_v14  ;;  %v26_v24 = vld [vmem:[%s3771_s0 + $0x60] sm:$0xff]  ;;  %v27_v28 = vld [vmem:[%s3771_s0 + $0x68] sm:$0xff]  ;;  %v28_v31 = vld [vmem:[%s3771_s0 + $0x70] sm:$0xff] }
   0xa   :  { %165 = vmatpush.msra.mxu0 %v49_v4  ;;  %382 = vmatpush.msra.mxu1 %v267_v19  ;;  %v2497_v25 = vld [vmem:[%s3770_s2] ss:$0 sm:$0xff]  ;;  %v29_v34 = vld [vmem:[%s3771_s0 + $0x78] sm:$0xff]  ;;  %v31_v52 = vld [vmem:[%s3771_s0 + $0x88] sm:$0xff] }
   0xb   :  { %2186 = vmatpush.msra.mxu3 %v267_v19  ;;  %v30_v37 = vld [vmem:[%s3771_s0 + $0x80] sm:$0xff]  ;;  %v32_v55 = vld [vmem:[%s3771_s0 + $0x90] sm:$0xff]  ;;  %v33_v58 = vld [vmem:[%s3771_s0 + $0x98] sm:$0xff] }
   0xc   :  { %166 = vmatpush.msra.mxu0 %v48_v5  ;;  %383 = vmatpush.msra.mxu1 %v266_v20  ;;  %v34_v63 = vld [vmem:[%s3771_s0 + $0xa0] sm:$0xff]  ;;  %v35_v4 = vld [vmem:[%s3771_s0 + $0xa8] sm:$0xff]  ;;  %v37_v14 = vld [vmem:[%s3771_s0 + $0xb8] sm:$0xff] }
   0xd   :  { %2187 = vmatpush.msra.mxu3 %v266_v20 }
   0xe   :  { %167 = vmatpush.msra.mxu0 %v47_v6 }
  0x10   :  { %168 = vmatpush.msra.mxu0 %v46_v7 }
  0x11   :  { %2024 = vmatmul.msk.f32.vlgmr.msra.gmra.mxu0 %vm56_vm0, %v14_v8 }
  0x19   :  { %2025 = vmatmul.msk.f32.gmra.mxu0 %vm56_vm0, %v15_v9  ;;  %v36_v9 = vld [vmem:[%s3771_s0 + $0xb0] sm:$0xff] }
  0x21   :  { %2026 = vmatmul.msk.f32.gmra.mxu0 %vm56_vm0, %v16_v10 }
  0x29   :  { %2027 = vmatmul.msk.f32.gmra.mxu0 %vm56_vm0, %v17_v11 }
  0x31   :  { %2028 = vmatmul.msk.f32.gmra.mxu0 %vm56_vm0, %v18_v13 }
  0x39   :  { %2029 = vmatmul.msk.f32.gmra.mxu0 %vm56_vm0, %v19_v15 }
  0x41   :  { %2030 = vmatmul.msk.f32.gmra.mxu0 %vm56_vm0, %v20_v16  ;;  %v38_v16 = vld [vmem:[%s3771_s0 + $0xc0] sm:$0xff] }
  0x49   :  { %2031 = vmatmul.msk.f32.gmra.mxu0 %vm56_vm0, %v21_v17 }
  0x51   :  { %2032 = vmatmul.msk.f32.gmra.mxu0 %vm56_vm0, %v22_v18 }
  0x59   :  { %2033 = vmatmul.msk.f32.gmra.mxu0 %vm56_vm0, %v23_v21 }
  0x61   :  { %2034 = vmatmul.msk.f32.gmra.mxu0 %vm56_vm0, %v24_v22 }
  0x69   :  { %2035 = vmatmul.msk.f32.gmra.mxu0 %vm56_vm0, %v25_v23 }
  0x71   :  { %2036 = vmatmul.msk.f32.gmra.mxu0 %vm56_vm0, %v26_v24 }
  0x79   :  { %2037 = vmatmul.msk.f32.gmra.mxu0 %vm56_vm0, %v27_v28 }
  0x81   :  { %2038 = vmatmul.msk.f32.gmra.mxu0 %vm56_vm0, %v28_v31  ;;  %v39_v31 = vld [vmem:[%s3771_s0 + $0xc8] sm:$0xff] }
  0x89   :  { %2039 = vmatmul.msk.f32.gmra.mxu0 %vm56_vm0, %v29_v34 }
  0x8e   :  { %v170_v26 = vpop.f32.mrf.mxu0 }
  0x8f   :  { %v2500_v27 = vadd.f32 %v2497_v25, %v170_v26 }
  0x91   :  { %2056 = vmatmul.msk.f32.vlgmr.msra.gmra.mxu1 %vm271_vm1, %v2500_v27  ;;  %2040 = vmatmul.msk.f32.gmra.mxu0 %vm56_vm0, %v30_v37 }
  0x96   :  { %v173_v29 = vpop.f32.mrf.mxu0 }
  0x97   :  { %v2509_v30 = vadd.f32 %v2497_v25, %v173_v29 }
  0x99   :  { %2057 = vmatmul.msk.f32.gmra.mxu1 %vm271_vm1, %v2509_v30  ;;  %2041 = vmatmul.msk.f32.gmra.mxu0 %vm56_vm0, %v31_v52 }
  0x9e   :  { %v176_v32 = vpop.f32.mrf.mxu0 }
  0x9f   :  { %v2518_v33 = vadd.f32 %v2497_v25, %v176_v32 }
  0xa1   :  { %2058 = vmatmul.msk.f32.gmra.mxu1 %vm271_vm1, %v2518_v33  ;;  %2042 = vmatmul.msk.f32.gmra.mxu0 %vm56_vm0, %v32_v55 }
  0xa6   :  { %v179_v35 = vpop.f32.mrf.mxu0 }
  0xa7   :  { %v2527_v36 = vadd.f32 %v2497_v25, %v179_v35 }
  0xa9   :  { %2059 = vmatmul.msk.f32.gmra.mxu1 %vm271_vm1, %v2527_v36  ;;  %2043 = vmatmul.msk.f32.gmra.mxu0 %vm56_vm0, %v33_v58 }
  0xae   :  { %v182_v38 = vpop.f32.mrf.mxu0 }
  0xaf   :  { %v2536_v39 = vadd.f32 %v2497_v25, %v182_v38 }
  0xb1   :  { %2060 = vmatmul.msk.f32.gmra.mxu1 %vm271_vm1, %v2536_v39  ;;  %2044 = vmatmul.msk.f32.gmra.mxu0 %vm56_vm0, %v34_v63 }
  0xb6   :  { %v185_v40 = vpop.f32.mrf.mxu0 }
  0xb7   :  { %v2541_v41 = vadd.f32 %v2497_v25, %v185_v40 }
  0xb9   :  { %2061 = vmatmul.msk.f32.gmra.mxu1 %vm271_vm1, %v2541_v41  ;;  %2045 = vmatmul.msk.f32.gmra.mxu0 %vm56_vm0, %v35_v4 }
  0xbe   :  { %v188_v42 = vpop.f32.mrf.mxu0 }
  0xbf   :  { %v2546_v43 = vadd.f32 %v2497_v25, %v188_v42  ;;  %v40_v42 = vld [vmem:[%s3771_s0 + $0xd0] sm:$0xff] }
  0xc1   :  { %2062 = vmatmul.msk.f32.gmra.mxu1 %vm271_vm1, %v2546_v43  ;;  %2046 = vmatmul.msk.f32.gmra.mxu0 %vm56_vm0, %v36_v9 }
  0xc6   :  { %v191_v44 = vpop.f32.mrf.mxu0 }
  0xc7   :  { %v2551_v45 = vadd.f32 %v2497_v25, %v191_v44 }
  0xc9   :  { %2063 = vmatmul.msk.f32.gmra.mxu1 %vm271_vm1, %v2551_v45  ;;  %2047 = vmatmul.msk.f32.gmra.mxu0 %vm56_vm0, %v37_v14 }
  0xce   :  { %v194_v46 = vpop.f32.mrf.mxu0 }
  0xcf   :  { %v2556_v47 = vadd.f32 %v2497_v25, %v194_v46 }
  0xd1   :  { %2064 = vmatmul.msk.f32.gmra.mxu1 %vm271_vm1, %v2556_v47  ;;  %2048 = vmatmul.msk.f32.gmra.mxu0 %vm56_vm0, %v38_v16 }
  0xd6   :  { %v197_v48 = vpop.f32.mrf.mxu0 }
  0xd7   :  { %v2561_v49 = vadd.f32 %v2497_v25, %v197_v48 }
  0xd9   :  { %2065 = vmatmul.msk.f32.gmra.mxu1 %vm271_vm1, %v2561_v49  ;;  %2049 = vmatmul.msk.f32.gmra.mxu0 %vm56_vm0, %v39_v31 }
  0xde   :  { %v200_v50 = vpop.f32.mrf.mxu0 }
  0xdf   :  { %v2566_v51 = vadd.f32 %v2497_v25, %v200_v50 }
  0xe1   :  { %2066 = vmatmul.msk.f32.gmra.mxu1 %vm271_vm1, %v2566_v51  ;;  %2050 = vmatmul.msk.f32.gmra.mxu0 %vm56_vm0, %v40_v42 }
  0xe6   :  { %v203_v53 = vpop.f32.mrf.mxu0 }
  0xe7   :  { %v2575_v54 = vadd.f32 %v2497_v25, %v203_v53 }
  0xe9   :  { %2067 = vmatmul.msk.f32.gmra.mxu1 %vm271_vm1, %v2575_v54 }
  0xee   :  { %v206_v56 = vpop.f32.mrf.mxu0 }
  0xef   :  { %v2584_v57 = vadd.f32 %v2497_v25, %v206_v56  ;;  %v41_v56 = vld [vmem:[%s3771_s0 + $0xd8] sm:$0xff] }
  0xf0   :  { %2051 = vmatmul.msk.f32.gmra.mxu0 %vm56_vm0, %v41_v56 }
  0xf1   :  { %2068 = vmatmul.msk.f32.gmra.mxu1 %vm271_vm1, %v2584_v57 }
  0xf6   :  { %v209_v61 = vpop.f32.mrf.mxu0 }
  0xf7   :  { %v2594_v62 = vadd.f32 %v2497_v25, %v209_v61 }
  0xf9   :  { %2069 = vmatmul.msk.f32.gmra.mxu1 %vm271_vm1, %v2594_v62 }
  0xfe   :  { %v212_v2 = vpop.f32.mrf.mxu0 }
  0xff   :  { %v2604_v3 = vadd.f32 %v2497_v25, %v212_v2 }
 0x101   :  { %2070 = vmatmul.msk.f32.gmra.mxu1 %vm271_vm1, %v2604_v3 }
 0x106   :  { %v215_v7 = vpop.f32.mrf.mxu0 }
 0x107   :  { %v2617_v8 = vadd.f32 %v2497_v25, %v215_v7 }
 0x109   :  { %2071 = vmatmul.msk.f32.gmra.mxu1 %vm271_vm1, %v2617_v8 }
 0x10e   :  { %v385_v59 = vpop.f32.mrf.mxu1  ;;  %v218_v12 = vpop.f32.mrf.mxu0 }
 0x10f   :  { %v482_v60 = vsel %vm481_vm2, %v385_v59, -inf  ;;  %v2630_v13 = vadd.f32 %v2497_v25, %v218_v12 }
 0x110   :  { %483 = vmax.xlane.f32.xlu0 %v482_v60 }
 0x111   :  { %2072 = vmatmul.msk.f32.vlgmr.msra.gmra.mxu3 %vm271_vm1, %v2630_v13 }
 0x116   :  { %v388_v0 = vpop.f32.mrf.mxu1  ;;  %v221_v24 = vpop.f32.mrf.mxu0 }
 0x117   :  { %v485_v1 = vsel %vm481_vm2, %v388_v0, -inf  ;;  %v2659_v26 = vadd.f32 %v2497_v25, %v221_v24 }
 0x118   :  { %486 = vmax.xlane.f32.xlu0 %v485_v1 }
 0x119   :  { %2073 = vmatmul.msk.f32.gmra.mxu3 %vm271_vm1, %v2659_v26 }
 0x11e   :  { %v2612_v5 = vpop.f32.mrf.mxu1  ;;  %v224_v29 = vpop.f32.mrf.mxu0 }
 0x11f   :  { %v488_v6 = vsel %vm481_vm2, %v2612_v5, -inf  ;;  %v2669_v32 = vadd.f32 %v2497_v25, %v224_v29 }
 0x120   :  { %489 = vmax.xlane.f32.xlu1 %v488_v6  ;;  %v42_v6 = vld [vmem:[%s3771_s0 + $0xe0] sm:$0xff] }
 0x121   :  { %2074 = vmatmul.msk.f32.gmra.mxu3 %vm271_vm1, %v2669_v32  ;;  %2052 = vmatmul.msk.f32.gmra.mxu0 %vm56_vm0, %v42_v6 }
 0x126   :  { %v2625_v10 = vpop.f32.mrf.mxu1  ;;  %v227_v40 = vpop.f32.mrf.mxu0 }
 0x127   :  { %v491_v11 = vsel %vm481_vm2, %v2625_v10, -inf  ;;  %v2680_v44 = vadd.f32 %v2497_v25, %v227_v40 }
 0x128   :  { %492 = vmax.xlane.f32.xlu1 %v491_v11 }
 0x129   :  { %2075 = vmatmul.msk.f32.gmra.mxu3 %vm271_vm1, %v2680_v44 }
 0x12e   :  { %v2638_v15 = vpop.f32.mrf.mxu1  ;;  %v230_v55 = vpop.f32.mrf.mxu0 }
 0x12f   :  { %v494_v17 = vsel %vm481_vm2, %v2638_v15, -inf }
 0x130   :  { %495 = vmax.xlane.f32.xlu2 %v494_v17 }
 0x136   :  { %v2646_v18 = vpop.f32.mrf.mxu1  ;;  %v233_v4 = vpop.f32.mrf.mxu0 }
 0x137   :  { %v497_v19 = vsel %vm481_vm2, %v2646_v18, -inf  ;;  %v2711_v7 = vadd.f32 %v2497_v25, %v233_v4 }
 0x138   :  { %498 = vmax.xlane.f32.xlu2 %v497_v19 }
 0x13e   :  { %v2650_v20 = vpop.f32.mrf.mxu1  ;;  %v236_v19 = vpop.f32.mrf.mxu0 }
 0x13f   :  { %v500_v21 = vsel %vm481_vm2, %v2650_v20, -inf }
 0x140   :  { %501 = vmax.xlane.f32.xlu0 %v500_v21  ;;  %v43_v21 = vld [vmem:[%s3771_s0 + $0xe8] sm:$0xff] }
 0x141   :  { %2053 = vmatmul.msk.f32.gmra.mxu0 %vm56_vm0, %v43_v21 }
 0x146   :  { %v2654_v22 = vpop.f32.mrf.mxu1  ;;  %v239_v40 = vpop.f32.mrf.mxu0 }
 0x147   :  { %v503_v23 = vsel %vm481_vm2, %v2654_v22, -inf  ;;  %v2744_v42 = vadd.f32 %v2497_v25, %v239_v40 }
 0x148   :  { %504 = vmax.xlane.f32.xlu2 %v503_v23  ;;  %v2729_v23 = vadd.f32 %v2497_v25, %v236_v19 }
 0x14e   :  { %v2663_v28 = vpop.f32.mrf.mxu1 }
 0x14f   :  { %v506_v2 = vsel %vm481_vm2, %v2663_v28, -inf }
 0x156   :  { %v2674_v38 = vpop.f32.mrf.mxu1 }
 0x157   :  { %v509_v17 = vsel %vm481_vm2, %v2674_v38, -inf }
 0x15e   :  { %v2692_v58 = vpop.f32.mrf.mxu1 }
 0x166   :  { %v2714_v9 = vpop.f32.mrf.mxu1 }
 0x167   :  { %v515_v56 = vsel %vm481_vm2, %v2714_v9, -inf }
 0x16e   :  { %v2735_v29 = vpop.f32.mrf.mxu1 }
 0x183   :  { %v484_v34 = vpop.xlane.xlu0 %483 }
 0x184   :  { %v578_v35 = vsub.f32 %v385_v59, %v484_v34  ;;  %v2695_v59 = vadd.f32 %v2497_v25, %v230_v55 }
 0x186   :  { %v610_v37 = vmul.f32 1.442695, %v578_v35  ;;  %2076 = vmatmul.msk.f32.gmra.mxu3 %vm271_vm1, %v2695_v59 }
 0x188   :  { %2193 = vpow2.f32 %v610_v37  ;;  %v512_v37 = vsel %vm481_vm2, %v2692_v58, -inf }
 0x18b   :  { %v487_v46 = vpop.xlane.xlu0 %486 }
 0x18c   :  { %v579_v48 = vsub.f32 %v388_v0, %v487_v46 }
 0x18e   :  { %v2685_v50 = vpop.eup %2193  ;;  %v612_v52 = vmul.f32 1.442695, %v579_v48  ;;  %2077 = vmatmul.msk.f32.gmra.mxu3 %vm271_vm1, %v2711_v7 }
 0x18f   :  { %v674_v53 = vsel %vm481_vm2, %v2685_v50, 0.0 }
 0x190   :  { %2195 = vpow2.f32 %v612_v52  ;;  %675 = vadd.xlane.f32.xlu1 %v674_v53 }
 0x193   :  { %v490_v60 = vpop.xlane.xlu1 %489 }
 0x194   :  { %v580_v61 = vsub.f32 %v2612_v5, %v490_v60  ;;  %v2759_v60 = vpop.f32.mrf.mxu1 }
 0x196   :  { %v2701_v63 = vpop.eup %2195  ;;  %v614_v0 = vmul.f32 1.442695, %v580_v61  ;;  %2078 = vmatmul.msk.f32.gmra.mxu3 %vm271_vm1, %v2729_v23  ;;  %v242_v61 = vpop.f32.mrf.mxu0 }
 0x197   :  { %v677_v1 = vsel %vm481_vm2, %v2701_v63, 0.0 }
 0x198   :  { %2197 = vpow2.f32 %v614_v0  ;;  %678 = vadd.xlane.f32.xlu0 %v677_v1  ;;  %507 = vmax.xlane.f32.xlu1 %v506_v2  ;;  %v45_v0 = vld [vmem:[%s3771_s0 + $0xf8] sm:$0xff]  ;;  %v2768_v1 = vadd.f32 %v2497_v25, %v242_v61 }
 0x19b   :  { %v493_v5 = vpop.xlane.xlu1 %492 }
 0x19c   :  { %v581_v11 = vsub.f32 %v2625_v10, %v493_v5 }
 0x19e   :  { %v2719_v12 = vpop.eup %2197  ;;  %v616_v14 = vmul.f32 1.442695, %v581_v11  ;;  %2079 = vmatmul.msk.f32.gmra.mxu3 %vm271_vm1, %v2744_v42 }
 0x19f   :  { %v680_v16 = vsel %vm481_vm2, %v2719_v12, 0.0 }
 0x1a0   :  { %2199 = vpow2.f32 %v616_v14  ;;  %681 = vadd.xlane.f32.xlu2 %v680_v16  ;;  %510 = vmax.xlane.f32.xlu0 %v509_v17  ;;  %v518_v14 = vsel %vm481_vm2, %v2735_v29, -inf  ;;  %v2780_v16 = vpop.f32.mrf.mxu1 }
 0x1a1   :  { %v524_v40 = vsel %vm481_vm2, %v2780_v16, -inf }
 0x1a3   :  { %v496_v10 = vpop.xlane.xlu2 %495 }
 0x1a4   :  { %v582_v24 = vsub.f32 %v2638_v15, %v496_v10  ;;  %v44_v15 = vld [vmem:[%s3771_s0 + $0xf0] sm:$0xff] }
 0x1a5   :  { %2054 = vmatmul.msk.f32.gmra.mxu0 %vm56_vm0, %v44_v15  ;;  %v2799_v15 = vpop.f32.mrf.mxu3 }
 0x1a6   :  { %v2737_v31 = vpop.eup %2199  ;;  %v618_v34 = vmul.f32 1.442695, %v582_v24  ;;  %2080 = vmatmul.msk.f32.gmra.mxu3 %vm271_vm1, %v2768_v1  ;;  %v521_v24 = vsel %vm481_vm2, %v2759_v60, -inf }
 0x1a7   :  { %v683_v35 = vsel %vm481_vm2, %v2737_v31, 0.0 }
 0x1a8   :  { %2201 = vpow2.f32 %v618_v34  ;;  %684 = vadd.xlane.f32.xlu1 %v683_v35  ;;  %513 = vmax.xlane.f32.xlu2 %v512_v37  ;;  %v2789_v34 = vpop.f32.mrf.mxu1 }
 0x1a9   :  { %v527_v37 = vsel %vm481_vm2, %v2789_v34, -inf }
 0x1ab   :  { %v499_v46 = vpop.xlane.xlu2 %498 }
 0x1ac   :  { %v583_v48 = vsub.f32 %v2646_v18, %v499_v46  ;;  %v270_v18 = vld [vmem:[%s3769_s1 + $0x60] sm:$0xff]  ;;  %v530_v46 = vsel %vm481_vm2, %v2799_v15, -inf }
 0x1ad   :  { %945 = vmatpush.msrb.mxu0 %v270_v18  ;;  %2188 = vmatpush.msra.mxu2 %v270_v18 }
 0x1ae   :  { %v2753_v52 = vpop.eup %2201  ;;  %v620_v53 = vmul.f32 1.442695, %v583_v48  ;;  %2055 = vmatmul.msk.f32.gmra.mxu0 %vm56_vm0, %v45_v0  ;;  %v245_v48 = vpop.f32.mrf.mxu0 }
 0x1af   :  { %v686_v55 = vsel %vm481_vm2, %v2753_v52, 0.0 }
 0x1b0   :  { %2203 = vpow2.f32 %v620_v53  ;;  %687 = vadd.xlane.f32.xlu0 %v686_v55  ;;  %516 = vmax.xlane.f32.xlu1 %v515_v56  ;;  %v2804_v53 = vadd.f32 %v2497_v25, %v245_v48 }
 0x1b2   :  { %2081 = vmatmul.msk.f32.gmra.mxu3 %vm271_vm1, %v2804_v53 }
 0x1b3   :  { %v502_v2 = vpop.xlane.xlu0 %501 }
 0x1b4   :  { %v584_v4 = vsub.f32 %v2650_v20, %v502_v2 }
 0x1b6   :  { %v2774_v6 = vpop.eup %2203  ;;  %v622_v5 = vmul.f32 1.442695, %v584_v4  ;;  %v248_v56 = vpop.f32.mrf.mxu0 }
 0x1b7   :  { %v689_v11 = vsel %vm481_vm2, %v2774_v6, 0.0  ;;  %v2809_v61 = vadd.f32 %v2497_v25, %v248_v56 }
 0x1b8   :  { %2205 = vpow2.f32 %v622_v5  ;;  %690 = vadd.xlane.f32.xlu2 %v689_v11  ;;  %519 = vmax.xlane.f32.xlu0 %v518_v14  ;;  %v2815_v11 = vpop.f32.mrf.mxu3 }
 0x1ba   :  { %2082 = vmatmul.msk.f32.gmra.mxu3 %vm271_vm1, %v2809_v61 }
 0x1bb   :  { %v505_v17 = vpop.xlane.xlu2 %504 }
 0x1bc   :  { %v585_v19 = vsub.f32 %v2654_v22, %v505_v17 }
 0x1be   :  { %v2783_v21 = vpop.eup %2205  ;;  %v624_v20 = vmul.f32 1.442695, %v585_v19  ;;  %v251_v17 = vpop.f32.mrf.mxu0 }
 0x1bf   :  { %v692_v10 = vsel %vm481_vm2, %v2783_v21, 0.0  ;;  %v2819_v19 = vadd.f32 %v2497_v25, %v251_v17 }
 0x1c0   :  { %2207 = vpow2.f32 %v624_v20  ;;  %693 = vadd.xlane.f32.xlu1 %v692_v10  ;;  %522 = vmax.xlane.f32.xlu2 %v521_v24 }
 0x1c2   :  { %2083 = vmatmul.msk.f32.gmra.mxu3 %vm271_vm1, %v2819_v19 }
 0x1c6   :  { %v2791_v35 = vpop.eup %2207  ;;  %v254_v48 = vpop.f32.mrf.mxu0 }
 0x1c7   :  { %v695_v22 = vsel %vm481_vm2, %v2791_v35, 0.0 }
 0x1c8   :  { %696 = vadd.xlane.f32.xlu0 %v695_v22  ;;  %525 = vmax.xlane.f32.xlu1 %v524_v40  ;;  %v2828_v40 = vpop.f32.mrf.mxu3 }
 0x1c9   :  { %528 = vmax.xlane.f32.xlu2 %v527_v37 }
 0x1ce   :  { %v257_v17 = vpop.f32.mrf.mxu0 }
 0x1d0   :  { %531 = vmax.xlane.f32.xlu1 %v530_v46 }
 0x203   :  { %v676_v55 = vpop.xlane.xlu1 %675 }
 0x204   :  { %2209 = vrcp.f32 %v676_v55 }
 0x20a   :  { %v2210_v0 = vpop.eup %2209 }
 0x20b   :  { %v802_v18 = vmul.f32 %v2210_v0, %v2685_v50  ;;  %v679_v2 = vpop.xlane.xlu0 %678  ;;  %v508_v4 = vpop.xlane.xlu1 %507 }
 0x20c   :  { %2211 = vrcp.f32 %v679_v2  ;;  %v586_v5 = vsub.f32 %v2663_v28, %v508_v4  ;;  %v533_v2 = vsel %vm481_vm2, %v2815_v11, -inf }
 0x20d   :  { %2088 = vmatmul.msk.f32.vlgmr.msrb.gmra.mxu0 %vm481_vm2, %v802_v18 }
 0x20e   :  { %v626_v14 = vmul.f32 1.442695, %v586_v5 }
 0x210   :  { %2213 = vpow2.f32 %v626_v14 }
 0x212   :  { %v2212_v20 = vpop.eup %2211 }
 0x213   :  { %v682_v50 = vpop.xlane.xlu2 %681  ;;  %v511_v10 = vpop.xlane.xlu0 %510  ;;  %v803_v24 = vmul.f32 %v2212_v20, %v2701_v63  ;;  %v2833_v63 = vadd.f32 %v2497_v25, %v254_v48 }
 0x214   :  { %2215 = vrcp.f32 %v682_v50  ;;  %v587_v28 = vsub.f32 %v2674_v38, %v511_v10 }
 0x215   :  { %2089 = vmatmul.msk.f32.gmra.mxu0 %vm481_vm2, %v803_v24  ;;  %2084 = vmatmul.msk.f32.gmra.mxu3 %vm271_vm1, %v2833_v63 }
 0x216   :  { %v2826_v37 = vpop.eup %2213  ;;  %v628_v22 = vmul.f32 1.442695, %v587_v28 }
 0x217   :  { %v698_v46 = vsel %vm481_vm2, %v2826_v37, 0.0 }
 0x218   :  { %2217 = vpow2.f32 %v628_v22  ;;  %699 = vadd.xlane.f32.xlu0 %v698_v46  ;;  %v536_v22 = vsel %vm481_vm2, %v2828_v40, -inf }
 0x21a   :  { %v2216_v55 = vpop.eup %2215 }
 0x21b   :  { %v685_v56 = vpop.xlane.xlu1 %684  ;;  %v514_v0 = vpop.xlane.xlu2 %513  ;;  %v804_v38 = vmul.f32 %v2216_v55, %v2719_v12 }
 0x21c   :  { %2219 = vrcp.f32 %v685_v56  ;;  %v588_v18 = vsub.f32 %v2692_v58, %v514_v0  ;;  %v2846_v12 = vpop.f32.mrf.mxu3  ;;  %v2849_v58 = vadd.f32 %v2497_v25, %v257_v17 }
 0x21d   :  { %2090 = vmatmul.msk.f32.gmra.mxu0 %vm481_vm2, %v804_v38 }
 0x21e   :  { %v2842_v4 = vpop.eup %2217  ;;  %v630_v5 = vmul.f32 1.442695, %v588_v18  ;;  %2085 = vmatmul.msk.f32.gmra.mxu3 %vm271_vm1, %v2849_v58 }
 0x21f   :  { %v701_v14 = vsel %vm481_vm2, %v2842_v4, 0.0 }
 0x220   :  { %2221 = vpow2.f32 %v630_v5  ;;  %534 = vmax.xlane.f32.xlu0 %v533_v2  ;;  %702 = vadd.xlane.f32.xlu2 %v701_v14  ;;  %v539_v14 = vsel %vm481_vm2, %v2846_v12, -inf }
 0x222   :  { %v2220_v20 = vpop.eup %2219 }
 0x223   :  { %v688_v50 = vpop.xlane.xlu0 %687  ;;  %v517_v10 = vpop.xlane.xlu1 %516  ;;  %v805_v24 = vmul.f32 %v2220_v20, %v2737_v31 }
 0x224   :  { %2223 = vrcp.f32 %v688_v50  ;;  %v589_v28 = vsub.f32 %v2714_v9, %v517_v10  ;;  %v260_v31 = vpop.f32.mrf.mxu0  ;;  %v2862_v9 = vpop.f32.mrf.mxu3 }
 0x225   :  { %2091 = vmatmul.msk.f32.gmra.mxu0 %vm481_vm2, %v805_v24  ;;  %v2865_v0 = vadd.f32 %v2497_v25, %v260_v31  ;;  %v542_v31 = vsel %vm481_vm2, %v2862_v9, -inf }
 0x226   :  { %v2858_v46 = vpop.eup %2221  ;;  %v632_v48 = vmul.f32 1.442695, %v589_v28 }
 0x227   :  { %v704_v55 = vsel %vm481_vm2, %v2858_v46, 0.0  ;;  %2086 = vmatmul.msk.f32.gmra.mxu3 %vm271_vm1, %v2865_v0 }
 0x228   :  { %2225 = vpow2.f32 %v632_v48  ;;  %705 = vadd.xlane.f32.xlu1 %v704_v55  ;;  %537 = vmax.xlane.f32.xlu2 %v536_v22 }
 0x22a   :  { %v2224_v56 = vpop.eup %2223 }
 0x22b   :  { %v691_v38 = vpop.xlane.xlu2 %690  ;;  %v520_v18 = vpop.xlane.xlu0 %519  ;;  %v806_v2 = vmul.f32 %v2224_v56, %v2753_v52 }
 0x22c   :  { %2227 = vrcp.f32 %v691_v38  ;;  %v590_v5 = vsub.f32 %v2735_v29, %v520_v18  ;;  %v263_v52 = vpop.f32.mrf.mxu0  ;;  %v2883_v55 = vpop.f32.mrf.mxu3 }
 0x22d   :  { %2092 = vmatmul.msk.f32.gmra.mxu0 %vm481_vm2, %v806_v2  ;;  %v2879_v29 = vadd.f32 %v2497_v25, %v263_v52 }
 0x22e   :  { %v2874_v17 = vpop.eup %2225  ;;  %v634_v20 = vmul.f32 1.442695, %v590_v5 }
 0x22f   :  { %v707_v50 = vsel %vm481_vm2, %v2874_v17, 0.0  ;;  %2087 = vmatmul.msk.f32.gmra.mxu3 %vm271_vm1, %v2879_v29 }
 0x230   :  { %2229 = vpow2.f32 %v634_v20  ;;  %708 = vadd.xlane.f32.xlu0 %v707_v50  ;;  %540 = vmax.xlane.f32.xlu1 %v539_v14 }
 0x232   :  { %v2228_v10 = vpop.eup %2227 }
 0x233   :  { %v694_v24 = vpop.xlane.xlu1 %693  ;;  %v523_v28 = vpop.xlane.xlu2 %522  ;;  %v807_v22 = vmul.f32 %v2228_v10, %v2774_v6  ;;  %v1077_v6 = vld [vmem:[%s3769_s1 + $0x78] sm:$0xff]  ;;  %v545_v10 = vsel %vm481_vm2, %v2883_v55, -inf }
 0x234   :  { %2231 = vrcp.f32 %v694_v24  ;;  %v591_v48 = vsub.f32 %v2759_v60, %v523_v28  ;;  %v1078_v60 = vld [vmem:[%s3769_s1 + $0x80] sm:$0xff] }
 0x235   :  { %2093 = vmatmul.msk.f32.gmra.mxu0 %vm481_vm2, %v807_v22  ;;  %1205 = vmatpush.msrb.mxu3 %v1078_v60  ;;  %v2908_v22 = vpop.f32.mrf.mxu3 }
 0x236   :  { %v2890_v56 = vpop.eup %2229  ;;  %v636_v25 = vmul.f32 1.442695, %v591_v48 }
 0x237   :  { %v710_v38 = vsel %vm481_vm2, %v2890_v56, 0.0  ;;  %1206 = vmatpush.msrb.mxu3 %v1077_v6 }
 0x238   :  { %2233 = vpow2.f32 %v636_v25  ;;  %543 = vmax.xlane.f32.xlu0 %v542_v31  ;;  %711 = vadd.xlane.f32.xlu2 %v710_v38  ;;  %v548_v38 = vsel %vm481_vm2, %v2908_v22, -inf }
 0x23a   :  { %v2232_v18 = vpop.eup %2231 }
 0x23b   :  { %v697_v2 = vpop.xlane.xlu0 %696  ;;  %v526_v5 = vpop.xlane.xlu1 %525  ;;  %v808_v14 = vmul.f32 %v2232_v18, %v2783_v21 }
 0x23c   :  { %2235 = vrcp.f32 %v697_v2  ;;  %v592_v20 = vsub.f32 %v2780_v16, %v526_v5  ;;  %v529_v50 = vpop.xlane.xlu2 %528 }
 0x23d   :  { %v593_v52 = vsub.f32 %v2789_v34, %v529_v50  ;;  %2094 = vmatmul.msk.f32.gmra.mxu0 %vm481_vm2, %v808_v14 }
 0x23e   :  { %v2906_v24 = vpop.eup %2233  ;;  %v638_v28 = vmul.f32 1.442695, %v592_v20 }
 0x23f   :  { %v640_v48 = vmul.f32 1.442695, %v593_v52  ;;  %v713_v21 = vsel %vm481_vm2, %v2906_v24, 0.0 }
 0x240   :  { %2237 = vpow2.f32 %v638_v28  ;;  %714 = vadd.xlane.f32.xlu1 %v713_v21  ;;  %546 = vmax.xlane.f32.xlu2 %v545_v10  ;;  %v1076_v10 = vld [vmem:[%s3769_s1 + $0x70] sm:$0xff]  ;;  %v1075_v28 = vld [vmem:[%s3769_s1 + $0x68] sm:$0xff] }
 0x241   :  { %2239 = vpow2.f32 %v640_v48  ;;  %1207 = vmatpush.msrb.mxu3 %v1076_v10 }
 0x242   :  { %v2236_v16 = vpop.eup %2235 }
 0x243   :  { %v532_v34 = vpop.xlane.xlu1 %531  ;;  %v809_v31 = vmul.f32 %v2236_v16, %v2791_v35  ;;  %1208 = vmatpush.msrb.mxu3 %v1075_v28 }
 0x244   :  { %v594_v25 = vsub.f32 %v2799_v15, %v532_v34  ;;  %v2925_v15 = vpop.f32.mrf.mxu3 }
 0x245   :  { %2095 = vmatmul.msk.f32.gmra.mxu0 %vm481_vm2, %v809_v31  ;;  %v551_v14 = vsel %vm481_vm2, %v2925_v15, -inf }
 0x246   :  { %v2917_v60 = vpop.eup %2237  ;;  %v642_v6 = vmul.f32 1.442695, %v594_v25 }
 0x247   :  { %v2919_v18 = vpop.eup %2239  ;;  %v716_v2 = vsel %vm481_vm2, %v2917_v60, 0.0 }
 0x248   :  { %2241 = vpow2.f32 %v642_v6  ;;  %717 = vadd.xlane.f32.xlu0 %v716_v2  ;;  %549 = vmax.xlane.f32.xlu2 %v548_v38  ;;  %v719_v35 = vsel %vm481_vm2, %v2919_v18, 0.0 }
 0x249   :  { %720 = vadd.xlane.f32.xlu1 %v719_v35 }
 0x24c   :  { %v2933_v50 = vpop.f32.mrf.mxu3 }
 0x24d   :  { %v554_v52 = vsel %vm481_vm2, %v2933_v50, -inf }
 0x24e   :  { %v2927_v5 = vpop.eup %2241 }
 0x24f   :  { %v722_v20 = vsel %vm481_vm2, %v2927_v5, 0.0 }
 0x250   :  { %723 = vadd.xlane.f32.xlu0 %v722_v20 }
 0x251   :  { %552 = vmax.xlane.f32.xlu1 %v551_v14 }
 0x254   :  { %v2956_v14 = vpop.f32.mrf.mxu3 }
 0x258   :  { %555 = vmax.xlane.f32.xlu0 %v554_v52 }
 0x28a   :  { %v947_v48 = vpop.f32.mrf.mxu0 }
 0x28b   :  { %v2944_v21 = vadd.f32 %v947_v48, %v2500_v27  ;;  %v700_v16 = vpop.xlane.xlu0 %699 }
 0x28c   :  { %2243 = vrcp.f32 %v700_v16 }
 0x28d   :  { %2120 = vmatmul.msk.f32.vlgmr.msrb.gmra.mxu3 %vm271_vm1, %v2944_v21 }
 0x292   :  { %v2244_v34 = vpop.eup %2243  ;;  %v950_v31 = vpop.f32.mrf.mxu0 }
 0x293   :  { %v2949_v25 = vadd.f32 %v950_v31, %v2509_v30  ;;  %v535_v38 = vpop.xlane.xlu0 %534  ;;  %v703_v6 = vpop.xlane.xlu2 %702  ;;  %v810_v2 = vmul.f32 %v2244_v34, %v2826_v37 }
 0x294   :  { %v595_v35 = vsub.f32 %v2815_v11, %v535_v38  ;;  %2245 = vrcp.f32 %v703_v6 }
 0x295   :  { %2096 = vmatmul.msk.f32.gmra.mxu0 %vm481_vm2, %v810_v2  ;;  %2121 = vmatmul.msk.f32.gmra.mxu3 %vm271_vm1, %v2949_v25 }
 0x296   :  { %v644_v27 = vmul.f32 1.442695, %v595_v35 }
 0x298   :  { %2247 = vpow2.f32 %v644_v27  ;;  %v557_v27 = vsel %vm481_vm2, %v2956_v14, -inf }
 0x29a   :  { %v2246_v20 = vpop.eup %2245  ;;  %v953_v52 = vpop.f32.mrf.mxu0 }
 0x29b   :  { %v2959_v30 = vadd.f32 %v953_v52, %v2518_v33  ;;  %v706_v10 = vpop.xlane.xlu1 %705  ;;  %v538_v28 = vpop.xlane.xlu2 %537  ;;  %v811_v37 = vmul.f32 %v2246_v20, %v2842_v4 }
 0x29c   :  { %2249 = vrcp.f32 %v706_v10  ;;  %v596_v11 = vsub.f32 %v2828_v40, %v538_v28  ;;  %v2970_v33 = vpop.f32.mrf.mxu3 }
 0x29d   :  { %2097 = vmatmul.msk.f32.gmra.mxu0 %vm481_vm2, %v811_v37  ;;  %2122 = vmatmul.msk.f32.gmra.mxu3 %vm271_vm1, %v2959_v30 }
 0x29e   :  { %v2966_v48 = vpop.eup %2247  ;;  %v646_v16 = vmul.f32 1.442695, %v596_v11 }
 0x29f   :  { %v725_v34 = vsel %vm481_vm2, %v2966_v48, 0.0 }
 0x2a0   :  { %2251 = vpow2.f32 %v646_v16  ;;  %726 = vadd.xlane.f32.xlu2 %v725_v34 }
 0x2a2   :  { %v2250_v31 = vpop.eup %2249  ;;  %v956_v4 = vpop.f32.mrf.mxu0 }
 0x2a3   :  { %v2973_v38 = vadd.f32 %v956_v4, %v2527_v36  ;;  %v709_v40 = vpop.xlane.xlu0 %708  ;;  %v541_v6 = vpop.xlane.xlu1 %540  ;;  %v812_v2 = vmul.f32 %v2250_v31, %v2858_v46  ;;  %v560_v31 = vsel %vm481_vm2, %v2970_v33, -inf }
 0x2a4   :  { %2253 = vrcp.f32 %v709_v40  ;;  %v597_v35 = vsub.f32 %v2846_v12, %v541_v6  ;;  %v2986_v12 = vpop.f32.mrf.mxu3 }
 0x2a5   :  { %2098 = vmatmul.msk.f32.gmra.mxu0 %vm481_vm2, %v812_v2  ;;  %2123 = vmatmul.msk.f32.gmra.mxu3 %vm271_vm1, %v2973_v38 }
 0x2a6   :  { %v2982_v20 = vpop.eup %2251  ;;  %v648_v52 = vmul.f32 1.442695, %v597_v35 }
 0x2a7   :  { %v728_v36 = vsel %vm481_vm2, %v2982_v20, 0.0 }
 0x2a8   :  { %2255 = vpow2.f32 %v648_v52  ;;  %558 = vmax.xlane.f32.xlu2 %v557_v27  ;;  %729 = vadd.xlane.f32.xlu1 %v728_v36  ;;  %v563_v36 = vsel %vm481_vm2, %v2986_v12, -inf }
 0x2aa   :  { %v2254_v46 = vpop.eup %2253  ;;  %v959_v10 = vpop.f32.mrf.mxu0 }
 0x2ab   :  { %v2989_v28 = vadd.f32 %v959_v10, %v2536_v39  ;;  %v544_v37 = vpop.xlane.xlu0 %543  ;;  %v712_v11 = vpop.xlane.xlu2 %711  ;;  %v813_v16 = vmul.f32 %v2254_v46, %v2874_v17 }
 0x2ac   :  { %v598_v34 = vsub.f32 %v2862_v9, %v544_v37  ;;  %2257 = vrcp.f32 %v712_v11  ;;  %v3012_v46 = vpop.f32.mrf.mxu3 }
 0x2ad   :  { %2099 = vmatmul.msk.f32.gmra.mxu0 %vm481_vm2, %v813_v16  ;;  %2124 = vmatmul.msk.f32.gmra.mxu3 %vm271_vm1, %v2989_v28 }
 0x2ae   :  { %v2998_v4 = vpop.eup %2255  ;;  %v650_v40 = vmul.f32 1.442695, %v598_v34 }
 0x2af   :  { %v731_v39 = vsel %vm481_vm2, %v2998_v4, 0.0 }
 0x2b0   :  { %2259 = vpow2.f32 %v650_v40  ;;  %732 = vadd.xlane.f32.xlu0 %v731_v39  ;;  %561 = vmax.xlane.f32.xlu1 %v560_v31 }
 0x2b2   :  { %v2258_v17 = vpop.eup %2257  ;;  %v962_v9 = vpop.f32.mrf.mxu0 }
 0x2b3   :  { %v3003_v6 = vadd.f32 %v962_v9, %v2541_v41  ;;  %v715_v2 = vpop.xlane.xlu1 %714  ;;  %v547_v35 = vpop.xlane.xlu2 %546  ;;  %v814_v27 = vmul.f32 %v2258_v17, %v2890_v56  ;;  %v566_v17 = vsel %vm481_vm2, %v3012_v46, -inf }
 0x2b4   :  { %2261 = vrcp.f32 %v715_v2  ;;  %v599_v52 = vsub.f32 %v2883_v55, %v547_v35 }
 0x2b5   :  { %2100 = vmatmul.msk.f32.gmra.mxu0 %vm481_vm2, %v814_v27  ;;  %2125 = vmatmul.msk.f32.gmra.mxu3 %vm271_vm1, %v3003_v6 }
 0x2b6   :  { %v3014_v10 = vpop.eup %2259  ;;  %v652_v41 = vmul.f32 1.442695, %v599_v52 }
 0x2b7   :  { %v734_v37 = vsel %vm481_vm2, %v3014_v10, 0.0 }
 0x2b8   :  { %2263 = vpow2.f32 %v652_v41  ;;  %564 = vmax.xlane.f32.xlu0 %v563_v36  ;;  %735 = vadd.xlane.f32.xlu2 %v734_v37 }
 0x2ba   :  { %v2262_v55 = vpop.eup %2261  ;;  %v965_v56 = vpop.f32.mrf.mxu0 }
 0x2bb   :  { %v3019_v11 = vadd.f32 %v965_v56, %v2546_v43  ;;  %v718_v16 = vpop.xlane.xlu0 %717  ;;  %v550_v34 = vpop.xlane.xlu2 %549  ;;  %v815_v31 = vmul.f32 %v2262_v55, %v2906_v24 }
 0x2bc   :  { %2265 = vrcp.f32 %v718_v16  ;;  %v721_v40 = vpop.xlane.xlu1 %720  ;;  %v600_v39 = vsub.f32 %v2908_v22, %v550_v34  ;;  %v3032_v24 = vpop.f32.mrf.mxu3 }
 0x2bd   :  { %2267 = vrcp.f32 %v721_v40  ;;  %2101 = vmatmul.msk.f32.gmra.mxu0 %vm481_vm2, %v815_v31  ;;  %2126 = vmatmul.msk.f32.gmra.mxu3 %vm271_vm1, %v3019_v11  ;;  %v569_v16 = vsel %vm481_vm2, %v3032_v24, -inf }
 0x2be   :  { %v3028_v9 = vpop.eup %2263  ;;  %v654_v43 = vmul.f32 1.442695, %v600_v39 }
 0x2bf   :  { %v737_v2 = vsel %vm481_vm2, %v3028_v9, 0.0 }
 0x2c0   :  { %2269 = vpow2.f32 %v654_v43  ;;  %567 = vmax.xlane.f32.xlu2 %v566_v17  ;;  %738 = vadd.xlane.f32.xlu1 %v737_v2 }
 0x2c2   :  { %v2266_v22 = vpop.eup %2265  ;;  %v968_v35 = vpop.f32.mrf.mxu0 }
 0x2c3   :  { %v2268_v27 = vpop.eup %2267  ;;  %v3035_v52 = vadd.f32 %v968_v35, %v2551_v45  ;;  %v724_v36 = vpop.xlane.xlu0 %723  ;;  %v816_v41 = vmul.f32 %v2266_v22, %v2917_v60 }
 0x2c4   :  { %2271 = vrcp.f32 %v724_v36  ;;  %v553_v37 = vpop.xlane.xlu1 %552  ;;  %v817_v55 = vmul.f32 %v2268_v27, %v2919_v18  ;;  %v3050_v18 = vpop.f32.mrf.mxu3 }
 0x2c5   :  { %v601_v56 = vsub.f32 %v2925_v15, %v553_v37  ;;  %2102 = vmatmul.msk.f32.gmra.mxu0 %vm481_vm2, %v816_v41  ;;  %2127 = vmatmul.msk.f32.gmra.mxu3 %vm271_vm1, %v3035_v52  ;;  %v572_v17 = vsel %vm481_vm2, %v3050_v18, -inf }
 0x2c6   :  { %v3045_v34 = vpop.eup %2269  ;;  %2103 = vmatmul.msk.f32.vlgmr.msra.gmra.mxu2 %vm481_vm2, %v817_v55 }
 0x2c7   :  { %v656_v45 = vmul.f32 1.442695, %v601_v56  ;;  %v740_v60 = vsel %vm481_vm2, %v3045_v34, 0.0 }
 0x2c8   :  { %570 = vmax.xlane.f32.xlu1 %v569_v16  ;;  %741 = vadd.xlane.f32.xlu0 %v740_v60 }
 0x2c9   :  { %2273 = vpow2.f32 %v656_v45 }
 0x2ca   :  { %v2272_v15 = vpop.eup %2271 }
 0x2cb   :  { %v556_v31 = vpop.xlane.xlu0 %555  ;;  %v818_v40 = vmul.f32 %v2272_v15, %v2927_v5 }
 0x2cc   :  { %v602_v39 = vsub.f32 %v2933_v50, %v556_v31  ;;  %v3061_v35 = vpop.f32.mrf.mxu3 }
 0x2cd   :  { %v575_v5 = vsel %vm481_vm2, %v3061_v35, -inf }
 0x2ce   :  { %v658_v43 = vmul.f32 1.442695, %v602_v39  ;;  %2104 = vmatmul.msk.f32.gmra.mxu2 %vm481_vm2, %v818_v40 }
 0x2cf   :  { %v3057_v2 = vpop.eup %2273 }
 0x2d0   :  { %2275 = vpow2.f32 %v658_v43  ;;  %v743_v22 = vsel %vm481_vm2, %v3057_v2, 0.0  ;;  %573 = vmax.xlane.f32.xlu0 %v572_v17 }
 0x2d1   :  { %744 = vadd.xlane.f32.xlu2 %v743_v22 }
 0x2d6   :  { %v3063_v27 = vpop.eup %2275 }
 0x2d7   :  { %v746_v50 = vsel %vm481_vm2, %v3063_v27, 0.0 }
 0x2d8   :  { %747 = vadd.xlane.f32.xlu1 %v746_v50 }
 0x2d9   :  { %576 = vmax.xlane.f32.xlu2 %v575_v5 }
 0x312   :  { %v971_v36 = vpop.f32.mrf.mxu0 }
 0x313   :  { %v3070_v41 = vadd.f32 %v971_v36, %v2556_v47  ;;  %v727_v37 = vpop.xlane.xlu2 %726 }
 0x314   :  { %2277 = vrcp.f32 %v727_v37 }
 0x315   :  { %2128 = vmatmul.msk.f32.gmra.mxu3 %vm271_vm1, %v3070_v41 }
 0x31a   :  { %v2278_v55 = vpop.eup %2277  ;;  %v974_v56 = vpop.f32.mrf.mxu0 }
 0x31b   :  { %v3075_v16 = vadd.f32 %v974_v56, %v2561_v49  ;;  %v730_v45 = vpop.xlane.xlu1 %729  ;;  %v559_v60 = vpop.xlane.xlu2 %558  ;;  %v819_v15 = vmul.f32 %v2278_v55, %v2966_v48 }
 0x31c   :  { %2279 = vrcp.f32 %v730_v45  ;;  %v603_v31 = vsub.f32 %v2956_v14, %v559_v60 }
 0x31d   :  { %2105 = vmatmul.msk.f32.gmra.mxu2 %vm481_vm2, %v819_v15  ;;  %2129 = vmatmul.msk.f32.gmra.mxu3 %vm271_vm1, %v3075_v16 }
 0x31e   :  { %v660_v47 = vmul.f32 1.442695, %v603_v31 }
 0x320   :  { %2281 = vpow2.f32 %v660_v47 }
 0x322   :  { %v2280_v40 = vpop.eup %2279  ;;  %v977_v39 = vpop.f32.mrf.mxu0 }
 0x323   :  { %v3083_v17 = vadd.f32 %v977_v39, %v2566_v51  ;;  %v733_v49 = vpop.xlane.xlu0 %732  ;;  %v562_v43 = vpop.xlane.xlu1 %561  ;;  %v820_v22 = vmul.f32 %v2280_v40, %v2982_v20 }
 0x324   :  { %2283 = vrcp.f32 %v733_v49  ;;  %v604_v48 = vsub.f32 %v2970_v33, %v562_v43 }
 0x325   :  { %2106 = vmatmul.msk.f32.gmra.mxu2 %vm481_vm2, %v820_v22  ;;  %2130 = vmatmul.msk.f32.gmra.mxu3 %vm271_vm1, %v3083_v17 }
 0x326   :  { %v3090_v14 = vpop.eup %2281  ;;  %v662_v5 = vmul.f32 1.442695, %v604_v48 }
 0x327   :  { %v749_v50 = vsel %vm481_vm2, %v3090_v14, 0.0 }
 0x328   :  { %2285 = vpow2.f32 %v662_v5  ;;  %750 = vadd.xlane.f32.xlu0 %v749_v50 }
 0x32a   :  { %v2284_v51 = vpop.eup %2283  ;;  %v980_v36 = vpop.f32.mrf.mxu0 }
 0x32b   :  { %v3095_v20 = vadd.f32 %v980_v36, %v2575_v54  ;;  %v565_v37 = vpop.xlane.xlu0 %564  ;;  %v736_v33 = vpop.xlane.xlu2 %735  ;;  %v821_v55 = vmul.f32 %v2284_v51, %v2998_v4 }
 0x32c   :  { %v605_v56 = vsub.f32 %v2986_v12, %v565_v37  ;;  %2287 = vrcp.f32 %v736_v33  ;;  %v1092_v37 = vld [vmem:[%s3769_s1 + $0xf0] sm:$0xff] }
 0x32d   :  { %2107 = vmatmul.msk.f32.gmra.mxu2 %vm481_vm2, %v821_v55  ;;  %2131 = vmatmul.msk.f32.gmra.mxu3 %vm271_vm1, %v3095_v20 }
 0x32e   :  { %v3102_v45 = vpop.eup %2285  ;;  %v664_v60 = vmul.f32 1.442695, %v605_v56 }
 0x32f   :  { %v752_v15 = vsel %vm481_vm2, %v3102_v45, 0.0 }
 0x330   :  { %2289 = vpow2.f32 %v664_v60  ;;  %753 = vadd.xlane.f32.xlu1 %v752_v15 }
 0x332   :  { %v2288_v54 = vpop.eup %2287  ;;  %v983_v31 = vpop.f32.mrf.mxu0 }
 0x333   :  { %v3107_v4 = vadd.f32 %v983_v31, %v2584_v57  ;;  %v739_v12 = vpop.xlane.xlu1 %738  ;;  %v568_v47 = vpop.xlane.xlu2 %567  ;;  %v822_v40 = vmul.f32 %v2288_v54, %v3014_v10  ;;  %v1094_v57 = vld [vmem:[%s3769_s1 + $0x100] sm:$0xff] }
 0x334   :  { %2291 = vrcp.f32 %v739_v12  ;;  %v606_v39 = vsub.f32 %v3012_v46, %v568_v47  ;;  %v1093_v46 = vld [vmem:[%s3769_s1 + $0xf8] sm:$0xff]  ;;  %1594 = vmatpush.msrb.mxu2 %v1094_v57 }
 0x335   :  { %2108 = vmatmul.msk.f32.gmra.mxu2 %vm481_vm2, %v822_v40  ;;  %2132 = vmatmul.msk.f32.gmra.mxu3 %vm271_vm1, %v3107_v4 }
 0x336   :  { %v3114_v49 = vpop.eup %2289  ;;  %v666_v43 = vmul.f32 1.442695, %v606_v39  ;;  %1595 = vmatpush.msrb.mxu2 %v1093_v46 }
 0x337   :  { %v755_v22 = vsel %vm481_vm2, %v3114_v49, 0.0 }
 0x338   :  { %2293 = vpow2.f32 %v666_v43  ;;  %756 = vadd.xlane.f32.xlu2 %v755_v22  ;;  %1596 = vmatpush.msrb.mxu2 %v1092_v37 }
 0x33a   :  { %v2292_v10 = vpop.eup %2291  ;;  %v986_v48 = vpop.f32.mrf.mxu0 }
 0x33b   :  { %v3125_v5 = vadd.f32 %v986_v48, %v2594_v62  ;;  %v571_v50 = vpop.xlane.xlu1 %570  ;;  %v742_v51 = vpop.xlane.xlu0 %741  ;;  %v823_v36 = vmul.f32 %v2292_v10, %v3028_v9  ;;  %v1091_v62 = vld [vmem:[%s3769_s1 + $0xe8] sm:$0xff] }
 0x33c   :  { %v607_v33 = vsub.f32 %v3032_v24, %v571_v50  ;;  %2295 = vrcp.f32 %v742_v51  ;;  %1597 = vmatpush.msrb.mxu2 %v1091_v62  ;;  %v1090_v62 = vld [vmem:[%s3769_s1 + $0xe0] sm:$0xff] }
 0x33d   :  { %2109 = vmatmul.msk.f32.gmra.mxu2 %vm481_vm2, %v823_v36  ;;  %2133 = vmatmul.msk.f32.gmra.mxu3 %vm271_vm1, %v3125_v5 }
 0x33e   :  { %v3138_v55 = vpop.eup %2293  ;;  %v668_v9 = vmul.f32 1.442695, %v607_v33  ;;  %1598 = vmatpush.msrb.mxu2 %v1090_v62 }
 0x33f   :  { %v758_v56 = vsel %vm481_vm2, %v3138_v55, 0.0 }
 0x340   :  { %2297 = vpow2.f32 %v668_v9  ;;  %759 = vadd.xlane.f32.xlu0 %v758_v56  ;;  %v1088_v56 = vld [vmem:[%s3769_s1 + $0xd0] sm:$0xff] }
 0x342   :  { %v2296_v24 = vpop.eup %2295  ;;  %v989_v60 = vpop.f32.mrf.mxu0 }
 0x343   :  { %v3143_v15 = vadd.f32 %v989_v60, %v2604_v3  ;;  %v574_v54 = vpop.xlane.xlu0 %573  ;;  %v824_v31 = vmul.f32 %v2296_v24, %v3045_v34  ;;  %v1087_v60 = vld [vmem:[%s3769_s1 + $0xc8] sm:$0xff] }
 0x344   :  { %v608_v12 = vsub.f32 %v3050_v18, %v574_v54  ;;  %v745_v47 = vpop.xlane.xlu2 %744 }
 0x345   :  { %2299 = vrcp.f32 %v745_v47  ;;  %2110 = vmatmul.msk.f32.gmra.mxu2 %vm481_vm2, %v824_v31  ;;  %2134 = vmatmul.msk.f32.gmra.mxu3 %vm271_vm1, %v3143_v15  ;;  %v1086_v47 = vld [vmem:[%s3769_s1 + $0xc0] sm:$0xff] }
 0x346   :  { %v3150_v40 = vpop.eup %2297  ;;  %v670_v39 = vmul.f32 1.442695, %v608_v12 }
 0x347   :  { %v761_v43 = vsel %vm481_vm2, %v3150_v40, 0.0 }
 0x348   :  { %2301 = vpow2.f32 %v670_v39  ;;  %762 = vadd.xlane.f32.xlu1 %v761_v43 }
 0x349   :  { %v992_v3 = vpop.f32.mrf.mxu2 }
 0x34a   :  { %v3155_v34 = vadd.f32 %v992_v3, %v2617_v8 }
 0x34b   :  { %v2300_v22 = vpop.eup %2299  ;;  %v748_v18 = vpop.xlane.xlu1 %747 }
 0x34c   :  { %2303 = vrcp.f32 %v748_v18  ;;  %v577_v57 = vpop.xlane.xlu2 %576  ;;  %v825_v46 = vmul.f32 %v2300_v22, %v3057_v2 }
 0x34d   :  { %v609_v10 = vsub.f32 %v3061_v35, %v577_v57  ;;  %2135 = vmatmul.msk.f32.gmra.mxu3 %vm271_vm1, %v3155_v34  ;;  %v1085_v57 = vld [vmem:[%s3769_s1 + $0xb8] sm:$0xff] }
 0x34e   :  { %v3161_v48 = vpop.eup %2301  ;;  %2111 = vmatmul.msk.f32.gmra.mxu2 %vm481_vm2, %v825_v46 }
 0x34f   :  { %v672_v50 = vmul.f32 1.442695, %v609_v10  ;;  %v764_v51 = vsel %vm481_vm2, %v3161_v48, 0.0 }
 0x350   :  { %765 = vadd.xlane.f32.xlu2 %v764_v51 }
 0x351   :  { %2305 = vpow2.f32 %v672_v50  ;;  %v995_v8 = vpop.f32.mrf.mxu2 }
 0x352   :  { %v2304_v36 = vpop.eup %2303  ;;  %v3167_v37 = vadd.f32 %v995_v8, %v2630_v13  ;;  %v1210_v13 = vpop.f32.mrf.mxu3 }
 0x353   :  { %v826_v2 = vmul.f32 %v2304_v36, %v3063_v27  ;;  %v1089_v27 = vld [vmem:[%s3769_s1 + $0xd8] sm:$0xff]  ;;  %v1084_v36 = vld [vmem:[%s3769_s1 + $0xb0] sm:$0xff] }
 0x354   :  { %1599 = vmatpush.msrb.mxu2 %v1089_v27 }
 0x355   :  { %2136 = vmatmul.msk.f32.gmra.mxu3 %vm271_vm1, %v3167_v37 }
 0x356   :  { %2112 = vmatmul.msk.f32.gmra.mxu2 %vm481_vm2, %v826_v2 }
 0x357   :  { %v3173_v35 = vpop.eup %2305  ;;  %1600 = vmatpush.msrb.mxu2 %v1088_v56 }
 0x358   :  { %v767_v33 = vsel %vm481_vm2, %v3173_v35, 0.0 }
 0x359   :  { %768 = vadd.xlane.f32.xlu0 %v767_v33  ;;  %1601 = vmatpush.msrb.mxu2 %v1087_v60 }
 0x35a   :  { %v1213_v9 = vpop.f32.mrf.mxu3 }
 0x35b   :  { %1602 = vmatpush.msrb.mxu2 %v1086_v47 }
 0x35d   :  { %1603 = vmatpush.msrb.mxu2 %v1085_v57 }
 0x35f   :  { %1604 = vmatpush.msrb.mxu2 %v1084_v36 }
 0x362   :  { %v3186_v24 = vpop.f32.mrf.mxu3 }
 0x36a   :  { %v3197_v43 = vpop.f32.mrf.mxu3 }
 0x39b   :  { %v751_v54 = vpop.xlane.xlu0 %750 }
 0x39c   :  { %2307 = vrcp.f32 %v751_v54 }
 0x3a0   :  { %v998_v31 = vpop.f32.mrf.mxu2 }
 0x3a1   :  { %v3192_v12 = vadd.f32 %v998_v31, %v2659_v26 }
 0x3a2   :  { %v2308_v39 = vpop.eup %2307 }
 0x3a3   :  { %v754_v3 = vpop.xlane.xlu1 %753  ;;  %2137 = vmatmul.msk.f32.gmra.mxu3 %vm271_vm1, %v3192_v12  ;;  %v827_v22 = vmul.f32 %v2308_v39, %v3090_v14  ;;  %v3212_v14 = vpop.f32.mrf.mxu3  ;;  %v1080_v39 = vld [vmem:[%s3769_s1 + $0x90] sm:$0xff] }
 0x3a4   :  { %2309 = vrcp.f32 %v754_v3 }
 0x3a5   :  { %2113 = vmatmul.msk.f32.gmra.mxu2 %vm481_vm2, %v827_v22 }
 0x3a8   :  { %v1001_v18 = vpop.f32.mrf.mxu2 }
 0x3a9   :  { %v3204_v26 = vadd.f32 %v1001_v18, %v2669_v32  ;;  %v3218_v32 = vld [vmem:[%s3770_s2 + $0x1] ss:$0 sm:$0xff] }
 0x3aa   :  { %v2310_v46 = vpop.eup %2309  ;;  %v3254_v3 = vadd.f32 %v3218_v32, %v1213_v9  ;;  %v3273_v36 = vadd.f32 %v3218_v32, %v3186_v24 }
 0x3ab   :  { %2138 = vmatmul.msk.f32.gmra.mxu3 %vm271_vm1, %v3204_v26  ;;  %v757_v10 = vpop.xlane.xlu2 %756  ;;  %v828_v50 = vmul.f32 %v2310_v46, %v3102_v45  ;;  %v3227_v45 = vadd.f32 %v3218_v32, %v1210_v13  ;;  %v3238_v56 = vpop.f32.mrf.mxu3  ;;  %v1082_v13 = vld [vmem:[%s3769_s1 + $0xa0] sm:$0xff] }
 0x3ac   :  { %2311 = vrcp.f32 %v757_v10  ;;  %v1307_v9 = vmul.f32 %v3254_v3, %v3254_v3 }
 0x3ad   :  { %2114 = vmatmul.msk.f32.gmra.mxu2 %vm481_vm2, %v828_v50  ;;  %v1306_v27 = vmul.f32 %v3227_v45, %v3227_v45 }
 0x3af   :  { %v1338_v47 = vmul.f32 %v1306_v27, %v3227_v45 }
 0x3b0   :  { %v1004_v51 = vpop.f32.mrf.mxu2 }
 0x3b1   :  { %v3221_v8 = vadd.f32 %v1004_v51, %v2680_v44  ;;  %v1083_v44 = vld [vmem:[%s3769_s1 + $0xa8] sm:$0xff]  ;;  %v1370_v57 = vmul.f32 0.044715, %v1338_v47 }
 0x3b2   :  { %v2312_v2 = vpop.eup %2311  ;;  %1605 = vmatpush.msrb.mxu2 %v1083_v44  ;;  %v1308_v44 = vmul.f32 %v3273_v36, %v3273_v36 }
 0x3b3   :  { %2139 = vmatmul.msk.f32.gmra.mxu3 %vm271_vm1, %v3221_v8  ;;  %v760_v33 = vpop.xlane.xlu0 %759  ;;  %v829_v62 = vmul.f32 %v2312_v2, %v3114_v49  ;;  %v1081_v49 = vld [vmem:[%s3769_s1 + $0x98] sm:$0xff]  ;;  %v3265_v46 = vpop.f32.mrf.mxu3  ;;  %v1402_v51 = vadd.f32 %v1370_v57, %v3227_v45 }
 0x3b4   :  { %2313 = vrcp.f32 %v760_v33  ;;  %1606 = vmatpush.msrb.mxu2 %v1082_v13 }
 0x3b5   :  { %2115 = vmatmul.msk.f32.gmra.mxu2 %vm481_vm2, %v829_v62  ;;  %v1339_v62 = vmul.f32 %v1307_v9, %v3254_v3 }
 0x3b6   :  { %1607 = vmatpush.msrb.mxu2 %v1081_v49 }
 0x3b7   :  { %v1371_v27 = vmul.f32 0.044715, %v1339_v62 }
 0x3b8   :  { %v1007_v60 = vpop.f32.mrf.mxu2  ;;  %1608 = vmatpush.msrb.mxu2 %v1080_v39  ;;  %v1340_v39 = vmul.f32 %v1308_v44, %v3273_v36 }
 0x3b9   :  { %v3247_v54 = vadd.f32 %v1007_v60, %v2695_v59  ;;  %v1079_v59 = vld [vmem:[%s3769_s1 + $0x88] sm:$0xff]  ;;  %v1403_v47 = vadd.f32 %v1371_v27, %v3254_v3 }
 0x3ba   :  { %v2314_v31 = vpop.eup %2313  ;;  %1609 = vmatpush.msrb.mxu2 %v1079_v59  ;;  %v1372_v59 = vmul.f32 0.044715, %v1340_v39 }
 0x3bb   :  { %v763_v22 = vpop.xlane.xlu1 %762  ;;  %2140 = vmatmul.msk.f32.gmra.mxu3 %vm271_vm1, %v3247_v54  ;;  %v830_v18 = vmul.f32 %v2314_v31, %v3138_v55  ;;  %v1231_v49 = vpop.f32.mrf.mxu3 }
 0x3bc   :  { %2315 = vrcp.f32 %v763_v22 }
 0x3bd   :  { %2116 = vmatmul.msk.f32.gmra.mxu2 %vm481_vm2, %v830_v18  ;;  %v1435_v18 = vmul.f32 0.7978846, %v1403_v47 }
 0x3c0   :  { %v1010_v10 = vpop.f32.mrf.mxu2 }
 0x3c1   :  { %v3268_v50 = vadd.f32 %v1010_v10, %v2711_v7  ;;  %v1434_v7 = vmul.f32 0.7978846, %v1402_v51  ;;  %v1404_v51 = vadd.f32 %v1372_v59, %v3273_v36 }
 0x3c2   :  { %v2316_v55 = vpop.eup %2315 }
 0x3c3   :  { %2141 = vmatmul.msk.f32.gmra.mxu3 %vm271_vm1, %v3268_v50  ;;  %v766_v2 = vpop.xlane.xlu2 %765  ;;  %v831_v33 = vmul.f32 %v2316_v55, %v3150_v40  ;;  %v3287_v40 = vadd.f32 %v3218_v32, %v3197_v43  ;;  %v1234_v9 = vpop.f32.mrf.mxu3  ;;  %v3302_v55 = vadd.f32 %v3218_v32, %v3212_v14 }
 0x3c4   :  { %2317 = vrcp.f32 %v766_v2 }
 0x3c5   :  { %2117 = vmatmul.msk.f32.gmra.mxu2 %vm481_vm2, %v831_v33  ;;  %2319 = vtanh.f32 %v1434_v7  ;;  %v1436_v7 = vmul.f32 0.7978846, %v1404_v51 }
 0x3c8   :  { %v1013_v13 = vpop.f32.mrf.mxu2 }
 0x3c9   :  { %v3283_v24 = vadd.f32 %v1013_v13, %v2729_v23  ;;  %v1309_v23 = vmul.f32 %v3287_v40, %v3287_v40 }
 0x3ca   :  { %v2318_v60 = vpop.eup %2317 }
 0x3cb   :  { %2142 = vmatmul.msk.f32.gmra.mxu3 %vm271_vm1, %v3283_v24  ;;  %v832_v31 = vmul.f32 %v2318_v60, %v3161_v48  ;;  %v2320_v43 = vpop.eup %2319  ;;  %v1341_v2 = vmul.f32 %v1309_v23, %v3287_v40  ;;  %v1237_v39 = vpop.f32.mrf.mxu3 }
 0x3cc   :  { %v769_v22 = vpop.xlane.xlu0 %768  ;;  %v1498_v62 = vadd.f32 1.0, %v2320_v43 }
 0x3cd   :  { %2321 = vrcp.f32 %v769_v22  ;;  %2118 = vmatmul.msk.f32.gmra.mxu2 %vm481_vm2, %v832_v31  ;;  %v1373_v44 = vmul.f32 0.044715, %v1341_v2  ;;  %v3317_v31 = vadd.f32 %v3218_v32, %v3238_v56 }
 0x3ce   :  { %2323 = vtanh.f32 %v1435_v18  ;;  %v1530_v14 = vmul.f32 0.5, %v1498_v62  ;;  %v1776_v62 = vld [vmem:[%s3769_s1 + $0x120] sm:$0xff] }
 0x3cf   :  { %2325 = vtanh.f32 %v1436_v7  ;;  %1887 = vmatpush.msrb.mxu1 %v1776_v62 }
 0x3d0   :  { %v1562_v22 = vmul.f32 %v1530_v14, %v3227_v45 }
 0x3d1   :  { %v1016_v57 = vpop.f32.mrf.mxu2 }
 0x3d2   :  { %v3298_v10 = vadd.f32 %v1016_v57, %v2744_v42  ;;  %v1310_v42 = vmul.f32 %v3302_v55, %v3302_v55  ;;  %v3328_v57 = vadd.f32 %v3218_v32, %v3265_v46 }
 0x3d3   :  { %v2322_v48 = vpop.eup %2321 }
 0x3d4   :  { %2143 = vmatmul.msk.f32.gmra.mxu3 %vm271_vm1, %v3298_v10  ;;  %v833_v33 = vmul.f32 %v2322_v48, %v3173_v35  ;;  %v2324_v27 = vpop.eup %2323  ;;  %v1405_v35 = vadd.f32 %v1373_v44, %v3287_v40  ;;  %v1342_v47 = vmul.f32 %v1310_v42, %v3302_v55  ;;  %v1312_v42 = vmul.f32 %v3328_v57, %v3328_v57 }
 0x3d5   :  { %v1499_v23 = vadd.f32 1.0, %v2324_v27  ;;  %v2326_v43 = vpop.eup %2325  ;;  %v3339_v27 = vadd.f32 %v3218_v32, %v1231_v49 }
 0x3d6   :  { %2119 = vmatmul.msk.f32.gmra.mxu2 %vm481_vm2, %v833_v33  ;;  %v1437_v18 = vmul.f32 0.7978846, %v1405_v35  ;;  %v1374_v59 = vmul.f32 0.044715, %v1342_v47  ;;  %v1500_v2 = vadd.f32 1.0, %v2326_v43  ;;  %v1240_v33 = vpop.f32.mrf.mxu3  ;;  %v3348_v43 = vadd.f32 %v3218_v32, %v1234_v9 }
 0x3d7   :  { %v1531_v56 = vmul.f32 0.5, %v1499_v23  ;;  %v3356_v9 = vadd.f32 %v3218_v32, %v1237_v39  ;;  %v3365_v39 = vadd.f32 %v3218_v32, %v1240_v33 }
 0x3d8   :  { %2327 = vtanh.f32 %v1437_v18  ;;  %v1406_v48 = vadd.f32 %v1374_v59, %v3302_v55  ;;  %v1532_v44 = vmul.f32 0.5, %v1500_v2  ;;  %v1314_v2 = vmul.f32 %v3348_v43, %v3348_v43 }
 0x3d9   :  { %v1019_v13 = vpop.f32.mrf.mxu2  ;;  %v1563_v45 = vmul.f32 %v1531_v56, %v3254_v3 }
 0x3da   :  { %v3313_v60 = vadd.f32 %v1019_v13, %v2768_v1  ;;  %v1311_v1 = vmul.f32 %v3317_v31, %v3317_v31  ;;  %v1438_v7 = vmul.f32 0.7978846, %v1406_v48  ;;  %v1344_v13 = vmul.f32 %v1312_v42, %v3328_v57 }
 0x3db   :  { %v1564_v35 = vmul.f32 %v1532_v44, %v3273_v36  ;;  %v1346_v44 = vmul.f32 %v1314_v2, %v3348_v43 }
 0x3dc   :  { %2144 = vmatmul.msk.f32.gmra.mxu3 %vm271_vm1, %v3313_v60  ;;  %v1343_v51 = vmul.f32 %v1311_v1, %v3317_v31  ;;  %2329 = vtanh.f32 %v1438_v7  ;;  %v1376_v1 = vmul.f32 0.044715, %v1344_v13 }
 0x3dd   :  { %v1378_v13 = vmul.f32 0.044715, %v1346_v44 }
 0x3de   :  { %1610 = vmatmul.f32.vlgmr.msrb.gmra.mxu2 %v1562_v22  ;;  %v1375_v46 = vmul.f32 0.044715, %v1343_v51  ;;  %v2328_v14 = vpop.eup %2327  ;;  %v1313_v22 = vmul.f32 %v3339_v27, %v3339_v27  ;;  %v1243_v18 = vpop.f32.mrf.mxu3  ;;  %v1408_v48 = vadd.f32 %v1376_v1, %v3328_v57 }
 0x3df   :  { %v1501_v47 = vadd.f32 1.0, %v2328_v14  ;;  %v1410_v1 = vadd.f32 %v1378_v13, %v3348_v43  ;;  %v3373_v33 = vadd.f32 %v3218_v32, %v1243_v18  ;;  %v1775_v13 = vld [vmem:[%s3769_s1 + $0x118] sm:$0xff] }
 0x3e0   :  { %v1407_v3 = vadd.f32 %v1375_v46, %v3317_v31  ;;  %v1345_v49 = vmul.f32 %v1313_v22, %v3339_v27  ;;  %v1440_v62 = vmul.f32 0.7978846, %v1408_v48  ;;  %1888 = vmatpush.msrb.mxu1 %v1775_v13 }
 0x3e1   :  { %v1533_v59 = vmul.f32 0.5, %v1501_v47 }
 0x3e2   :  { %v1439_v23 = vmul.f32 0.7978846, %v1407_v3  ;;  %v2330_v56 = vpop.eup %2329 }
 0x3e3   :  { %v1565_v36 = vmul.f32 %v1533_v59, %v3287_v40  ;;  %v1502_v51 = vadd.f32 1.0, %v2330_v56 }
 0x3e4   :  { %2331 = vtanh.f32 %v1439_v23 }
 0x3e5   :  { %v1534_v42 = vmul.f32 0.5, %v1502_v51  ;;  %2333 = vtanh.f32 %v1440_v62  ;;  %v1442_v51 = vmul.f32 0.7978846, %v1410_v1 }
 0x3e6   :  { %1613 = vmatmul.f32.gmra.mxu2 %v1563_v45  ;;  %v1377_v45 = vmul.f32 0.044715, %v1345_v49  ;;  %v1246_v46 = vpop.f32.mrf.mxu3 }
 0x3e7   :  { %v1566_v40 = vmul.f32 %v1534_v42, %v3302_v55 }
 0x3e8   :  { %v1409_v14 = vadd.f32 %v1377_v45, %v3339_v27 }
 0x3ea   :  { %v2332_v7 = vpop.eup %2331  ;;  %v1441_v47 = vmul.f32 0.7978846, %v1409_v14 }
 0x3eb   :  { %v1503_v3 = vadd.f32 1.0, %v2332_v7  ;;  %v2334_v23 = vpop.eup %2333 }
 0x3ec   :  { %2335 = vtanh.f32 %v1441_v47  ;;  %v1504_v49 = vadd.f32 1.0, %v2334_v23 }
 0x3ed   :  { %v1535_v22 = vmul.f32 0.5, %v1503_v3  ;;  %2337 = vtanh.f32 %v1442_v51 }
 0x3ee   :  { %1616 = vmatmul.f32.gmra.mxu2 %v1564_v35  ;;  %v1315_v35 = vmul.f32 %v3356_v9, %v3356_v9  ;;  %v1249_v56 = vpop.f32.mrf.mxu3  ;;  %v1536_v45 = vmul.f32 0.5, %v1504_v49 }
 0x3ef   :  { %v1567_v55 = vmul.f32 %v1535_v22, %v3317_v31 }
 0x3f0   :  { %v1347_v59 = vmul.f32 %v1315_v35, %v3356_v9  ;;  %v1568_v7 = vmul.f32 %v1536_v45, %v3328_v57  ;;  %v3384_v57 = vadd.f32 %v3218_v32, %v1246_v46  ;;  %v3392_v46 = vadd.f32 %v3218_v32, %v1249_v56 }
 0x3f2   :  { %v1379_v48 = vmul.f32 0.044715, %v1347_v59  ;;  %v2336_v2 = vpop.eup %2335 }
 0x3f3   :  { %v1505_v31 = vadd.f32 1.0, %v2336_v2  ;;  %v2338_v47 = vpop.eup %2337 }
 0x3f4   :  { %v1411_v62 = vadd.f32 %v1379_v48, %v3356_v9  ;;  %v1506_v1 = vadd.f32 1.0, %v2338_v47 }
 0x3f5   :  { %v1537_v35 = vmul.f32 0.5, %v1505_v31 }
 0x3f6   :  { %1619 = vmatmul.f32.gmra.mxu2 %v1565_v36  ;;  %v1316_v36 = vmul.f32 %v3365_v39, %v3365_v39  ;;  %v1252_v44 = vpop.f32.mrf.mxu3  ;;  %v1443_v3 = vmul.f32 0.7978846, %v1411_v62 }
 0x3f7   :  { %v1569_v23 = vmul.f32 %v1537_v35, %v3339_v27  ;;  %v3400_v56 = vadd.f32 %v3218_v32, %v1252_v44 }
 0x3f8   :  { %v1348_v42 = vmul.f32 %v1316_v36, %v3365_v39  ;;  %2339 = vtanh.f32 %v1443_v3  ;;  %v1538_v36 = vmul.f32 0.5, %v1506_v1 }
 0x3fa   :  { %v1380_v14 = vmul.f32 0.044715, %v1348_v42  ;;  %v1570_v27 = vmul.f32 %v1538_v36, %v3348_v43 }
 0x3fc   :  { %v1412_v18 = vadd.f32 %v1380_v14, %v3365_v39 }
 0x3fe   :  { %1622 = vmatmul.f32.gmra.mxu2 %v1566_v40  ;;  %v1317_v40 = vmul.f32 %v3373_v33, %v3373_v33  ;;  %v1444_v49 = vmul.f32 0.7978846, %v1412_v18  ;;  %v1255_v48 = vpop.f32.mrf.mxu3  ;;  %v2340_v51 = vpop.eup %2339 }
 0x3ff   :  { %v1507_v62 = vadd.f32 1.0, %v2340_v51 }
 0x400   :  { %v1349_v22 = vmul.f32 %v1317_v40, %v3373_v33  ;;  %2341 = vtanh.f32 %v1444_v49 }
 0x401   :  { %v1539_v14 = vmul.f32 0.5, %v1507_v62 }
 0x402   :  { %v1381_v59 = vmul.f32 0.044715, %v1349_v22  ;;  %v1320_v22 = vmul.f32 %v3400_v56, %v3400_v56 }
 0x403   :  { %v1571_v43 = vmul.f32 %v1539_v14, %v3356_v9  ;;  %v3411_v9 = vadd.f32 %v3218_v32, %v1255_v48 }
 0x404   :  { %v1413_v45 = vadd.f32 %v1381_v59, %v3373_v33  ;;  %v1352_v51 = vmul.f32 %v1320_v22, %v3400_v56 }
 0x406   :  { %1625 = vmatmul.f32.gmra.mxu2 %v1567_v55  ;;  %v1318_v55 = vmul.f32 %v3384_v57, %v3384_v57  ;;  %v1445_v31 = vmul.f32 0.7978846, %v1413_v45  ;;  %v2342_v40 = vpop.eup %2341  ;;  %v1258_v3 = vpop.f32.mrf.mxu3 }
 0x407   :  { %v1508_v47 = vadd.f32 1.0, %v2342_v40 }
 0x408   :  { %v1350_v2 = vmul.f32 %v1318_v55, %v3384_v57  ;;  %2343 = vtanh.f32 %v1445_v31 }
 0x409   :  { %v1540_v59 = vmul.f32 0.5, %v1508_v47 }
 0x40a   :  { %v1382_v42 = vmul.f32 0.044715, %v1350_v2 }
 0x40b   :  { %v1572_v45 = vmul.f32 %v1540_v59, %v3365_v39 }
 0x40c   :  { %v1414_v13 = vadd.f32 %v1382_v42, %v3384_v57  ;;  %v1774_v42 = vld [vmem:[%s3769_s1 + $0x110] sm:$0xff] }
 0x40d   :  { %1889 = vmatpush.msrb.mxu1 %v1774_v42 }
 0x40e   :  { %1628 = vmatmul.f32.gmra.mxu2 %v1568_v7  ;;  %v1319_v7 = vmul.f32 %v3392_v46, %v3392_v46  ;;  %v2344_v55 = vpop.eup %2343 }
 0x40f   :  { %v1509_v2 = vadd.f32 1.0, %v2344_v55 }
 0x410   :  { %v1351_v35 = vmul.f32 %v1319_v7, %v3392_v46 }
 0x411   :  { %v1541_v48 = vmul.f32 0.5, %v1509_v2 }
 0x412   :  { %v1383_v18 = vmul.f32 0.044715, %v1351_v35 }
 0x414   :  { %v1415_v44 = vadd.f32 %v1383_v18, %v3392_v46 }
 0x416   :  { %1631 = vmatmul.f32.gmra.mxu2 %v1569_v23  ;;  %v1446_v23 = vmul.f32 0.7978846, %v1414_v13  ;;  %v1447_v62 = vmul.f32 0.7978846, %v1415_v44  ;;  %v3427_v13 = vadd.f32 %v3218_v32, %v1258_v3 }
 0x418   :  { %2345 = vtanh.f32 %v1446_v23 }
 0x419   :  { %2347 = vtanh.f32 %v1447_v62 }
 0x41e   :  { %1634 = vmatmul.f32.gmra.mxu2 %v1570_v27  ;;  %v1384_v27 = vmul.f32 0.044715, %v1352_v51  ;;  %v2346_v31 = vpop.eup %2345 }
 0x41f   :  { %v1510_v47 = vadd.f32 1.0, %v2346_v31  ;;  %v2348_v59 = vpop.eup %2347 }
 0x420   :  { %v1416_v39 = vadd.f32 %v1384_v27, %v3400_v56 }
 0x422   :  { %v1448_v22 = vmul.f32 0.7978846, %v1416_v39 }
 0x424   :  { %2349 = vtanh.f32 %v1448_v22 }
 0x426   :  { %1637 = vmatmul.f32.gmra.mxu2 %v1571_v43  ;;  %v1261_v36 = vpop.f32.mrf.mxu3  ;;  %v1573_v43 = vmul.f32 %v1541_v48, %v3373_v33 }
 0x427   :  { %v3440_v51 = vadd.f32 %v3218_v32, %v1261_v36 }
 0x428   :  { %v1022_v1 = vpop.f32.mrf.mxu2 }
 0x429   :  { %v3406_v49 = vadd.f32 %v1022_v1, %v2804_v53  ;;  %v1321_v53 = vmul.f32 %v3411_v9, %v3411_v9  ;;  %v1542_v1 = vmul.f32 0.5, %v1510_v47 }
 0x42b   :  { %2145 = vmatmul.msk.f32.gmra.mxu3 %vm271_vm1, %v3406_v49  ;;  %v1353_v40 = vmul.f32 %v1321_v53, %v3411_v9  ;;  %v1574_v33 = vmul.f32 %v1542_v1, %v3384_v57 }
 0x42d   :  { %v1385_v18 = vmul.f32 0.044715, %v1353_v40 }
 0x42e   :  { %1640 = vmatmul.f32.gmra.mxu2 %v1572_v45  ;;  %v1264_v35 = vpop.f32.mrf.mxu3  ;;  %v1511_v45 = vadd.f32 1.0, %v2348_v59 }
 0x42f   :  { %v1417_v55 = vadd.f32 %v1385_v18, %v3411_v9  ;;  %v3453_v57 = vadd.f32 %v3218_v32, %v1264_v35 }
 0x430   :  { %v1025_v7 = vpop.f32.mrf.mxu2  ;;  %v1543_v42 = vmul.f32 0.5, %v1511_v45 }
 0x431   :  { %v3422_v14 = vadd.f32 %v1025_v7, %v2809_v61  ;;  %v1322_v61 = vmul.f32 %v3427_v13, %v3427_v13  ;;  %v1449_v53 = vmul.f32 0.7978846, %v1417_v55  ;;  %v2350_v7 = vpop.eup %2349  ;;  %v1324_v47 = vmul.f32 %v3453_v57, %v3453_v57 }
 0x432   :  { %v1575_v39 = vmul.f32 %v1543_v42, %v3392_v46  ;;  %v1512_v40 = vadd.f32 1.0, %v2350_v7 }
 0x433   :  { %2146 = vmatmul.msk.f32.gmra.mxu3 %vm271_vm1, %v3422_v14  ;;  %v1354_v44 = vmul.f32 %v1322_v61, %v3427_v13  ;;  %2351 = vtanh.f32 %v1449_v53  ;;  %v1356_v59 = vmul.f32 %v1324_v47, %v3453_v57 }
 0x434   :  { %v1544_v22 = vmul.f32 0.5, %v1512_v40 }
 0x435   :  { %v1386_v27 = vmul.f32 0.044715, %v1354_v44  ;;  %v1388_v45 = vmul.f32 0.044715, %v1356_v59 }
 0x436   :  { %1643 = vmatmul.f32.gmra.mxu2 %v1573_v43  ;;  %v1267_v2 = vpop.f32.mrf.mxu3  ;;  %v1773_v43 = vld [vmem:[%s3769_s1 + $0x108] sm:$0xff]  ;;  %v1576_v44 = vmul.f32 %v1544_v22, %v3400_v56 }
 0x437   :  { %v1418_v48 = vadd.f32 %v1386_v27, %v3427_v13  ;;  %1890 = vmatpush.msrb.mxu1 %v1773_v43  ;;  %v3469_v55 = vadd.f32 %v3218_v32, %v1267_v2  ;;  %v1420_v7 = vadd.f32 %v1388_v45, %v3453_v57  ;;  %v3505_v45 = vld [vmem:[%s3770_s2 + $0x2] ss:$0 sm:$0xff] }
 0x438   :  { %v1028_v23 = vpop.f32.mrf.mxu2 }
 0x439   :  { %v3435_v3 = vadd.f32 %v1028_v23, %v2819_v19  ;;  %v1323_v19 = vmul.f32 %v3440_v51, %v3440_v51  ;;  %v1450_v18 = vmul.f32 0.7978846, %v1418_v48  ;;  %v2352_v23 = vpop.eup %2351  ;;  %v1452_v43 = vmul.f32 0.7978846, %v1420_v7 }
 0x43b   :  { %2147 = vmatmul.msk.f32.gmra.mxu3 %vm271_vm1, %v3435_v3  ;;  %v1355_v31 = vmul.f32 %v1323_v19, %v3440_v51  ;;  %2353 = vtanh.f32 %v1450_v18 }
 0x43e   :  { %1646 = vmatmul.f32.gmra.mxu2 %v1574_v33  ;;  %v1270_v35 = vpop.f32.mrf.mxu3  ;;  %v1513_v33 = vadd.f32 1.0, %v2352_v23 }
 0x43f   :  { %v3482_v56 = vadd.f32 %v3218_v32, %v1270_v35 }
 0x440   :  { %v1031_v62 = vpop.f32.mrf.mxu2  ;;  %v1545_v53 = vmul.f32 0.5, %v1513_v33 }
 0x441   :  { %v3448_v36 = vadd.f32 %v1031_v62, %v2833_v63  ;;  %v1387_v63 = vmul.f32 0.044715, %v1355_v31  ;;  %v2354_v62 = vpop.eup %2353 }
 0x442   :  { %v1577_v31 = vmul.f32 %v1545_v53, %v3411_v9 }
 0x443   :  { %2148 = vmatmul.msk.f32.gmra.mxu3 %vm271_vm1, %v3448_v36  ;;  %v1419_v46 = vadd.f32 %v1387_v63, %v3440_v51 }
 0x445   :  { %v1451_v27 = vmul.f32 0.7978846, %v1419_v46 }
 0x446   :  { %1649 = vmatmul.f32.gmra.mxu2 %v1575_v39  ;;  %v1273_v2 = vpop.f32.mrf.mxu3  ;;  %v1514_v39 = vadd.f32 1.0, %v2354_v62 }
 0x447   :  { %2355 = vtanh.f32 %v1451_v27  ;;  %v3495_v23 = vadd.f32 %v3218_v32, %v1273_v2 }
 0x448   :  { %v1034_v61 = vpop.f32.mrf.mxu2  ;;  %v1546_v63 = vmul.f32 0.5, %v1514_v39  ;;  %2357 = vtanh.f32 %v1452_v43 }
 0x449   :  { %v3464_v1 = vadd.f32 %v1034_v61, %v2849_v58  ;;  %v1325_v58 = vmul.f32 %v3469_v55, %v3469_v55 }
 0x44a   :  { %v1578_v46 = vmul.f32 %v1546_v63, %v3427_v13 }
 0x44b   :  { %2149 = vmatmul.msk.f32.gmra.mxu3 %vm271_vm1, %v3464_v1  ;;  %v1357_v48 = vmul.f32 %v1325_v58, %v3469_v55 }
 0x44d   :  { %v1389_v40 = vmul.f32 0.044715, %v1357_v48  ;;  %v2356_v47 = vpop.eup %2355 }
 0x44e   :  { %1652 = vmatmul.f32.gmra.mxu2 %v1576_v44  ;;  %v1276_v9 = vpop.f32.mrf.mxu3  ;;  %v1515_v59 = vadd.f32 1.0, %v2356_v47  ;;  %v2358_v27 = vpop.eup %2357 }
 0x44f   :  { %v1421_v35 = vadd.f32 %v1389_v40, %v3469_v55  ;;  %v3511_v2 = vadd.f32 %v3218_v32, %v1276_v9 }
 0x450   :  { %v1037_v19 = vpop.f32.mrf.mxu2  ;;  %v1547_v58 = vmul.f32 0.5, %v1515_v59 }
 0x451   :  { %v3477_v42 = vadd.f32 %v1037_v19, %v2865_v0  ;;  %v1326_v0 = vmul.f32 %v3482_v56, %v3482_v56  ;;  %v1453_v33 = vmul.f32 0.7978846, %v1421_v35 }
 0x452   :  { %v1579_v48 = vmul.f32 %v1547_v58, %v3440_v51 }
 0x453   :  { %2150 = vmatmul.msk.f32.gmra.mxu3 %vm271_vm1, %v3477_v42  ;;  %v1358_v22 = vmul.f32 %v1326_v0, %v3482_v56  ;;  %2359 = vtanh.f32 %v1453_v33 }
 0x455   :  { %v1390_v44 = vmul.f32 0.044715, %v1358_v22 }
 0x456   :  { %1655 = vmatmul.f32.gmra.mxu2 %v1577_v31  ;;  %v1516_v31 = vadd.f32 1.0, %v2358_v27 }
 0x457   :  { %v1422_v62 = vadd.f32 %v1390_v44, %v3482_v56  ;;  %v1279_v39 = vpop.f32.mrf.mxu3 }
 0x458   :  { %v1548_v43 = vmul.f32 0.5, %v1516_v31  ;;  %v3522_v51 = vadd.f32 %v3218_v32, %v1279_v39 }
 0x459   :  { %v1040_v18 = vpop.f32.mrf.mxu2  ;;  %v1454_v0 = vmul.f32 0.7978846, %v1422_v62  ;;  %v2360_v63 = vpop.eup %2359 }
 0x45a   :  { %v3490_v61 = vadd.f32 %v1040_v18, %v2879_v29  ;;  %v1327_v29 = vmul.f32 %v3495_v23, %v3495_v23  ;;  %v1517_v59 = vadd.f32 1.0, %v2360_v63 }
 0x45b   :  { %2361 = vtanh.f32 %v1454_v0 }
 0x45c   :  { %2151 = vmatmul.msk.f32.gmra.mxu3 %vm271_vm1, %v3490_v61  ;;  %v1359_v13 = vmul.f32 %v1327_v29, %v3495_v23  ;;  %v1549_v58 = vmul.f32 0.5, %v1517_v59 }
 0x45e   :  { %1658 = vmatmul.f32.gmra.mxu2 %v1578_v46  ;;  %v1391_v40 = vmul.f32 0.044715, %v1359_v13  ;;  %v1580_v46 = vmul.f32 %v1548_v43, %v3453_v57 }
 0x45f   :  { %v1282_v33 = vpop.f32.mrf.mxu3 }
 0x460   :  { %v1423_v35 = vadd.f32 %v1391_v40, %v3495_v23  ;;  %v1283_v57 = vadd.f32 %v3218_v32, %v1282_v33 }
 0x461   :  { %v1611_v19 = vpop.f32.mrf.mxu2  ;;  %v2362_v27 = vpop.eup %2361 }
 0x462   :  { %v1707_v53 = vadd.f32 %v1611_v19, %v2944_v21  ;;  %v1328_v21 = vmul.f32 %v3511_v2, %v3511_v2  ;;  %v1455_v29 = vmul.f32 0.7978846, %v1423_v35  ;;  %v1518_v31 = vadd.f32 1.0, %v2362_v27 }
 0x463   :  { %v1330_v40 = vmul.f32 %v1283_v57, %v1283_v57 }
 0x464   :  { %v1741_v7 = vadd.f32 %v3505_v45, %v1707_v53  ;;  %v1360_v22 = vmul.f32 %v1328_v21, %v3511_v2  ;;  %2363 = vtanh.f32 %v1455_v29  ;;  %v1550_v0 = vmul.f32 0.5, %v1518_v31 }
 0x466   :  { %1661 = vmatmul.f32.gmra.mxu2 %v1579_v48  ;;  %2152 = vmatmul.msk.f32.vlgmr.msrb.gmra.mxu1 %vm271_vm1, %v1741_v7  ;;  %v1392_v44 = vmul.f32 0.044715, %v1360_v22  ;;  %v1581_v48 = vmul.f32 %v1549_v58, %v3469_v55  ;;  %v1582_v55 = vmul.f32 %v1550_v0, %v3482_v56 }
 0x468   :  { %v1424_v62 = vadd.f32 %v1392_v44, %v3511_v2 }
 0x469   :  { %v1614_v47 = vpop.f32.mrf.mxu2 }
 0x46a   :  { %v1708_v18 = vadd.f32 %v1614_v47, %v2949_v25  ;;  %v1329_v25 = vmul.f32 %v3522_v51, %v3522_v51  ;;  %v1456_v21 = vmul.f32 0.7978846, %v1424_v62 }
 0x46c   :  { %v1742_v9 = vadd.f32 %v3505_v45, %v1708_v18  ;;  %v1361_v13 = vmul.f32 %v1329_v25, %v3522_v51  ;;  %v1362_v18 = vmul.f32 %v1330_v40, %v1283_v57  ;;  %2365 = vtanh.f32 %v1456_v21 }
 0x46e   :  { %1664 = vmatmul.f32.gmra.mxu2 %v1580_v46  ;;  %2153 = vmatmul.msk.f32.gmra.mxu1 %vm271_vm1, %v1742_v9  ;;  %v1393_v39 = vmul.f32 0.044715, %v1361_v13  ;;  %v1394_v9 = vmul.f32 0.044715, %v1362_v18 }
 0x470   :  { %v1425_v47 = vadd.f32 %v1393_v39, %v3522_v51 }
 0x471   :  { %v1617_v19 = vpop.f32.mrf.mxu2 }
 0x472   :  { %v1709_v53 = vadd.f32 %v1617_v19, %v2959_v30  ;;  %v2364_v30 = vpop.eup %2363  ;;  %v1457_v46 = vmul.f32 0.7978846, %v1425_v47 }
 0x473   :  { %v1519_v22 = vadd.f32 1.0, %v2364_v30  ;;  %v2366_v44 = vpop.eup %2365 }
 0x474   :  { %v1743_v7 = vadd.f32 %v3505_v45, %v1709_v53  ;;  %2367 = vtanh.f32 %v1457_v46  ;;  %v1520_v27 = vadd.f32 1.0, %v2366_v44 }
 0x475   :  { %v1551_v59 = vmul.f32 0.5, %v1519_v22 }
 0x476   :  { %1667 = vmatmul.f32.gmra.mxu2 %v1581_v48  ;;  %2154 = vmatmul.msk.f32.gmra.mxu1 %vm271_vm1, %v1743_v7  ;;  %v1552_v19 = vmul.f32 0.5, %v1520_v27 }
 0x477   :  { %v1583_v58 = vmul.f32 %v1551_v59, %v3495_v23 }
 0x479   :  { %v1620_v43 = vpop.f32.mrf.mxu2 }
 0x47a   :  { %v1710_v63 = vadd.f32 %v1620_v43, %v2973_v38  ;;  %v1426_v38 = vadd.f32 %v1394_v9, %v1283_v57  ;;  %v2368_v53 = vpop.eup %2367 }
 0x47b   :  { %v1521_v48 = vadd.f32 1.0, %v2368_v53 }
 0x47c   :  { %v1744_v35 = vadd.f32 %v3505_v45, %v1710_v63  ;;  %v1458_v56 = vmul.f32 0.7978846, %v1426_v38 }
 0x47d   :  { %v1553_v23 = vmul.f32 0.5, %v1521_v48 }
 0x47e   :  { %1670 = vmatmul.f32.gmra.mxu2 %v1582_v55  ;;  %2155 = vmatmul.msk.f32.gmra.mxu1 %vm271_vm1, %v1744_v35  ;;  %2369 = vtanh.f32 %v1458_v56 }
 0x47f   :  { %v1585_v0 = vmul.f32 %v1553_v23, %v3522_v51 }
 0x481   :  { %v1623_v25 = vpop.f32.mrf.mxu2 }
 0x482   :  { %v1711_v29 = vadd.f32 %v1623_v25, %v2989_v28  ;;  %v1584_v28 = vmul.f32 %v1552_v19, %v3511_v2 }
 0x484   :  { %v1745_v33 = vadd.f32 %v3505_v45, %v1711_v29  ;;  %v2370_v31 = vpop.eup %2369 }
 0x485   :  { %v1522_v30 = vadd.f32 1.0, %v2370_v31 }
 0x486   :  { %1673 = vmatmul.f32.gmra.mxu2 %v1583_v58  ;;  %2156 = vmatmul.msk.f32.gmra.mxu1 %vm271_vm1, %v1745_v33 }
 0x489   :  { %v1626_v62 = vpop.f32.mrf.mxu2 }
 0x48a   :  { %v1712_v13 = vadd.f32 %v1626_v62, %v3003_v6  ;;  %v1554_v6 = vmul.f32 0.5, %v1522_v30 }
 0x48c   :  { %v1746_v7 = vadd.f32 %v3505_v45, %v1712_v13  ;;  %v1586_v47 = vmul.f32 %v1554_v6, %v1283_v57 }
 0x48e   :  { %1676 = vmatmul.f32.gmra.mxu2 %v1584_v28  ;;  %2157 = vmatmul.msk.f32.gmra.mxu1 %vm271_vm1, %v1746_v7 }
 0x491   :  { %v1629_v39 = vpop.f32.mrf.mxu2 }
 0x492   :  { %v1713_v40 = vadd.f32 %v1629_v39, %v3019_v11 }
 0x494   :  { %v1747_v21 = vadd.f32 %v3505_v45, %v1713_v40 }
 0x496   :  { %1679 = vmatmul.f32.gmra.mxu2 %v1585_v0  ;;  %2158 = vmatmul.msk.f32.gmra.mxu1 %vm271_vm1, %v1747_v21 }
 0x499   :  { %v1632_v43 = vpop.f32.mrf.mxu2 }
 0x49a   :  { %v1714_v2 = vadd.f32 %v1632_v43, %v3035_v52 }
 0x49c   :  { %v1748_v63 = vadd.f32 %v3505_v45, %v1714_v2 }
 0x49e   :  { %1682 = vmatmul.f32.gmra.mxu2 %v1586_v47  ;;  %2159 = vmatmul.msk.f32.gmra.mxu1 %vm271_vm1, %v1748_v63 }
 0x4a1   :  { %v1635_v18 = vpop.f32.mrf.mxu2 }
 0x4a2   :  { %v1715_v11 = vadd.f32 %v1635_v18, %v3070_v41 }
 0x4a4   :  { %v1749_v35 = vadd.f32 %v3505_v45, %v1715_v11 }
 0x4a6   :  { %2160 = vmatmul.msk.f32.gmra.mxu1 %vm271_vm1, %v1749_v35 }
 0x4a9   :  { %v1638_v51 = vpop.f32.mrf.mxu2 }
 0x4aa   :  { %v1716_v55 = vadd.f32 %v1638_v51, %v3075_v16 }
 0x4ac   :  { %v1750_v22 = vadd.f32 %v3505_v45, %v1716_v55 }
 0x4ae   :  { %2161 = vmatmul.msk.f32.gmra.mxu1 %vm271_vm1, %v1750_v22  ;;  %v1285_v52 = vpop.f32.mrf.mxu3 }
 0x4af   :  { %v1286_v57 = vadd.f32 %v3218_v32, %v1285_v52 }
 0x4b1   :  { %v1331_v9 = vmul.f32 %v1286_v57, %v1286_v57  ;;  %v1641_v46 = vpop.f32.mrf.mxu2 }
 0x4b2   :  { %v1717_v59 = vadd.f32 %v1641_v46, %v3083_v17 }
 0x4b3   :  { %v1363_v44 = vmul.f32 %v1331_v9, %v1286_v57 }
 0x4b4   :  { %v1751_v41 = vadd.f32 %v3505_v45, %v1717_v59 }
 0x4b5   :  { %v1395_v25 = vmul.f32 0.044715, %v1363_v44 }
 0x4b6   :  { %2162 = vmatmul.msk.f32.gmra.mxu1 %vm271_vm1, %v1751_v41  ;;  %v1288_v29 = vpop.f32.mrf.mxu3 }
 0x4b7   :  { %v1427_v38 = vadd.f32 %v1395_v25, %v1286_v57  ;;  %v1289_v16 = vadd.f32 %v3218_v32, %v1288_v29 }
 0x4b9   :  { %v1332_v33 = vmul.f32 %v1289_v16, %v1289_v16  ;;  %v1644_v58 = vpop.f32.mrf.mxu2  ;;  %v1459_v27 = vmul.f32 0.7978846, %v1427_v38 }
 0x4ba   :  { %v1718_v56 = vadd.f32 %v1644_v58, %v3095_v20 }
 0x4bb   :  { %v1364_v19 = vmul.f32 %v1332_v33, %v1289_v16  ;;  %2371 = vtanh.f32 %v1459_v27 }
 0x4bc   :  { %v1752_v53 = vadd.f32 %v3505_v45, %v1718_v56 }
 0x4bd   :  { %v1396_v17 = vmul.f32 0.044715, %v1364_v19 }
 0x4be   :  { %2163 = vmatmul.msk.f32.gmra.mxu1 %vm271_vm1, %v1752_v53  ;;  %v1291_v62 = vpop.f32.mrf.mxu3 }
 0x4bf   :  { %v1428_v13 = vadd.f32 %v1396_v17, %v1289_v16  ;;  %v1292_v7 = vadd.f32 %v3218_v32, %v1291_v62 }
 0x4c1   :  { %v2372_v28 = vpop.eup %2371  ;;  %v1333_v48 = vmul.f32 %v1292_v7, %v1292_v7  ;;  %v1647_v23 = vpop.f32.mrf.mxu2  ;;  %v1460_v31 = vmul.f32 0.7978846, %v1428_v13 }
 0x4c2   :  { %v1719_v39 = vadd.f32 %v1647_v23, %v3107_v4  ;;  %v1523_v40 = vadd.f32 1.0, %v2372_v28 }
 0x4c3   :  { %v1365_v21 = vmul.f32 %v1333_v48, %v1292_v7  ;;  %2373 = vtanh.f32 %v1460_v31 }
 0x4c4   :  { %v1753_v20 = vadd.f32 %v3505_v45, %v1719_v39  ;;  %v1555_v0 = vmul.f32 0.5, %v1523_v40 }
 0x4c5   :  { %v1397_v30 = vmul.f32 0.044715, %v1365_v21 }
 0x4c6   :  { %2164 = vmatmul.msk.f32.gmra.mxu1 %vm271_vm1, %v1753_v20  ;;  %v1294_v6 = vpop.f32.mrf.mxu3  ;;  %v1587_v43 = vmul.f32 %v1555_v0, %v1286_v57 }
 0x4c7   :  { %v1429_v2 = vadd.f32 %v1397_v30, %v1292_v7  ;;  %v1295_v63 = vadd.f32 %v3218_v32, %v1294_v6 }
 0x4c8   :  { %1685 = vmatmul.f32.gmra.mxu2 %v1587_v43  ;;  %v3591_v43 = vld [vmem:[%s3770_s2 + $0x3] ss:$0 sm:$0xff] }
 0x4c9   :  { %v2374_v47 = vpop.eup %2373  ;;  %v1334_v18 = vmul.f32 %v1295_v63, %v1295_v63  ;;  %v1650_v11 = vpop.f32.mrf.mxu2  ;;  %v1461_v35 = vmul.f32 0.7978846, %v1429_v2 }
 0x4ca   :  { %v1720_v4 = vadd.f32 %v1650_v11, %v3125_v5  ;;  %v1524_v51 = vadd.f32 1.0, %v2374_v47 }
 0x4cb   :  { %v1366_v55 = vmul.f32 %v1334_v18, %v1295_v63  ;;  %2375 = vtanh.f32 %v1461_v35 }
 0x4cc   :  { %v1754_v22 = vadd.f32 %v3505_v45, %v1720_v4  ;;  %v1556_v52 = vmul.f32 0.5, %v1524_v51 }
 0x4cd   :  { %v1398_v9 = vmul.f32 0.044715, %v1366_v55 }
 0x4ce   :  { %2165 = vmatmul.msk.f32.gmra.mxu1 %vm271_vm1, %v1754_v22  ;;  %v1297_v57 = vpop.f32.mrf.mxu3  ;;  %v1588_v46 = vmul.f32 %v1556_v52, %v1289_v16 }
 0x4cf   :  { %v1430_v59 = vadd.f32 %v1398_v9, %v1295_v63  ;;  %v1298_v44 = vadd.f32 %v3218_v32, %v1297_v57  ;;  %v2385_v32 = vld [vmem:[%s3770_s2 + $0x1] ss:$0 sm:$0xff] }
 0x4d0   :  { %1688 = vmatmul.f32.gmra.mxu2 %v1588_v46 }
 0x4d1   :  { %v2376_v41 = vpop.eup %2375  ;;  %v1335_v25 = vmul.f32 %v1298_v44, %v1298_v44  ;;  %v1653_v29 = vpop.f32.mrf.mxu2  ;;  %v1462_v38 = vmul.f32 0.7978846, %v1430_v59 }
 0x4d2   :  { %v1721_v5 = vadd.f32 %v1653_v29, %v3143_v15  ;;  %v1525_v33 = vadd.f32 1.0, %v2376_v41 }
 0x4d3   :  { %v1367_v58 = vmul.f32 %v1335_v25, %v1298_v44  ;;  %2377 = vtanh.f32 %v1462_v38 }
 0x4d4   :  { %v1755_v27 = vadd.f32 %v3505_v45, %v1721_v5  ;;  %v1557_v56 = vmul.f32 0.5, %v1525_v33 }
 0x4d5   :  { %v1399_v19 = vmul.f32 0.044715, %v1367_v58 }
 0x4d6   :  { %2166 = vmatmul.msk.f32.gmra.mxu1 %vm271_vm1, %v1755_v27  ;;  %v1300_v16 = vpop.f32.mrf.mxu3  ;;  %v1589_v53 = vmul.f32 %v1557_v56, %v1292_v7 }
 0x4d7   :  { %v1431_v17 = vadd.f32 %v1399_v19, %v1298_v44  ;;  %v1301_v62 = vadd.f32 %v2385_v32, %v1300_v16 }
 0x4d8   :  { %1691 = vmatmul.f32.gmra.mxu2 %v1589_v53 }
 0x4d9   :  { %v2378_v13 = vpop.eup %2377  ;;  %v1336_v15 = vmul.f32 %v1301_v62, %v1301_v62  ;;  %v1656_v28 = vpop.f32.mrf.mxu2  ;;  %v1463_v48 = vmul.f32 0.7978846, %v1431_v17 }
 0x4da   :  { %v1722_v23 = vadd.f32 %v1656_v28, %v3155_v34  ;;  %v1526_v31 = vadd.f32 1.0, %v2378_v13 }
 0x4db   :  { %v1368_v39 = vmul.f32 %v1336_v15, %v1301_v62  ;;  %2379 = vtanh.f32 %v1463_v48 }
 0x4dc   :  { %v1756_v40 = vadd.f32 %v3505_v45, %v1722_v23  ;;  %v1558_v21 = vmul.f32 0.5, %v1526_v31 }
 0x4dd   :  { %v1400_v7 = vmul.f32 0.044715, %v1368_v39 }
 0x4de   :  { %2167 = vmatmul.msk.f32.gmra.mxu1 %vm271_vm1, %v1756_v40  ;;  %v1590_v20 = vmul.f32 %v1558_v21, %v1295_v63 }
 0x4df   :  { %v1432_v0 = vadd.f32 %v1400_v7, %v1301_v62  ;;  %v1303_v30 = vpop.f32.mrf.mxu3 }
 0x4e0   :  { %v1304_v6 = vadd.f32 %v2385_v32, %v1303_v30  ;;  %1694 = vmatmul.f32.gmra.mxu2 %v1590_v20 }
 0x4e1   :  { %v2380_v34 = vpop.eup %2379  ;;  %v1659_v2 = vpop.f32.mrf.mxu2  ;;  %v1464_v47 = vmul.f32 0.7978846, %v1432_v0 }
 0x4e2   :  { %v1337_v18 = vmul.f32 %v1304_v6, %v1304_v6  ;;  %v1723_v11 = vadd.f32 %v1659_v2, %v3167_v37  ;;  %v1527_v35 = vadd.f32 1.0, %v2380_v34 }
 0x4e3   :  { %v1892_v4 = vpop.f32.mrf.mxu1  ;;  %2381 = vtanh.f32 %v1464_v47 }
 0x4e4   :  { %v1369_v51 = vmul.f32 %v1337_v18, %v1304_v6  ;;  %v1757_v63 = vadd.f32 %v3505_v45, %v1723_v11  ;;  %v1893_v55 = vadd.f32 %v3591_v43, %v1892_v4  ;;  %v1559_v22 = vmul.f32 0.5, %v1527_v35 }
 0x4e6   :  { %v1401_v52 = vmul.f32 0.044715, %v1369_v51  ;;  %1988 = vst [vmem:[%s3772_s3] sm:$0xff] %v1893_v55  ;;  %2168 = vmatmul.msk.f32.gmra.mxu1 %vm271_vm1, %v1757_v63  ;;  %v1591_v9 = vmul.f32 %v1559_v22, %v1298_v44 }
 0x4e8   :  { %v1433_v57 = vadd.f32 %v1401_v52, %v1304_v6  ;;  %1697 = vmatmul.f32.gmra.mxu2 %v1591_v9 }
 0x4e9   :  { %v2382_v37 = vpop.eup %2381  ;;  %v1662_v46 = vpop.f32.mrf.mxu2 }
 0x4ea   :  { %v1724_v59 = vadd.f32 %v1662_v46, %v3192_v12  ;;  %v1528_v41 = vadd.f32 1.0, %v2382_v37  ;;  %v1465_v25 = vmul.f32 0.7978846, %v1433_v57 }
 0x4eb   :  { %v1895_v29 = vpop.f32.mrf.mxu1 }
 0x4ec   :  { %v1758_v38 = vadd.f32 %v3505_v45, %v1724_v59  ;;  %v1896_v5 = vadd.f32 %v3591_v43, %v1895_v29  ;;  %v1560_v33 = vmul.f32 0.5, %v1528_v41  ;;  %2383 = vtanh.f32 %v1465_v25 }
 0x4ee   :  { %1989 = vst [vmem:[%s3772_s3 + $0x8] sm:$0xff] %v1896_v5  ;;  %2169 = vmatmul.msk.f32.gmra.mxu1 %vm271_vm1, %v1758_v38  ;;  %v1592_v44 = vmul.f32 %v1560_v33, %v1301_v62 }
 0x4f0   :  { %1700 = vmatmul.f32.gmra.mxu2 %v1592_v44 }
 0x4f1   :  { %v1665_v58 = vpop.f32.mrf.mxu2 }
 0x4f2   :  { %v2384_v27 = vpop.eup %2383  ;;  %v1725_v12 = vadd.f32 %v1665_v58, %v3204_v26 }
 0x4f3   :  { %v1898_v56 = vpop.f32.mrf.mxu1  ;;  %v1529_v19 = vadd.f32 1.0, %v2384_v27 }
 0x4f4   :  { %v1759_v16 = vadd.f32 %v3505_v45, %v1725_v12  ;;  %v1899_v53 = vadd.f32 %v3591_v43, %v1898_v56 }
 0x4f5   :  { %v1561_v17 = vmul.f32 0.5, %v1529_v19 }
 0x4f6   :  { %1990 = vst [vmem:[%s3772_s3 + $0x10] sm:$0xff] %v1899_v53  ;;  %2170 = vmatmul.msk.f32.gmra.mxu1 %vm271_vm1, %v1759_v16 }
 0x4f7   :  { %v1593_v32 = vmul.f32 %v1561_v17, %v1304_v6 }
 0x4f9   :  { %v1668_v62 = vpop.f32.mrf.mxu2  ;;  %1703 = vmatmul.f32.gmra.mxu2 %v1593_v32 }
 0x4fa   :  { %v1726_v13 = vadd.f32 %v1668_v62, %v3221_v8 }
 0x4fb   :  { %v1901_v15 = vpop.f32.mrf.mxu1 }
 0x4fc   :  { %v1760_v26 = vadd.f32 %v3505_v45, %v1726_v13  ;;  %v1902_v28 = vadd.f32 %v3591_v43, %v1901_v15 }
 0x4fe   :  { %1991 = vst [vmem:[%s3772_s3 + $0x18] sm:$0xff] %v1902_v28  ;;  %2171 = vmatmul.msk.f32.gmra.mxu1 %vm271_vm1, %v1760_v26 }
 0x501   :  { %v1671_v48 = vpop.f32.mrf.mxu2 }
 0x502   :  { %v1727_v23 = vadd.f32 %v1671_v48, %v3247_v54 }
 0x503   :  { %v1904_v31 = vpop.f32.mrf.mxu1 }
 0x504   :  { %v1761_v39 = vadd.f32 %v3505_v45, %v1727_v23  ;;  %v1905_v40 = vadd.f32 %v3591_v43, %v1904_v31 }
 0x506   :  { %1992 = vst [vmem:[%s3772_s3 + $0x20] sm:$0xff] %v1905_v40  ;;  %2172 = vmatmul.msk.f32.gmra.mxu1 %vm271_vm1, %v1761_v39 }
 0x509   :  { %v1674_v8 = vpop.f32.mrf.mxu2 }
 0x50a   :  { %v1728_v21 = vadd.f32 %v1674_v8, %v3268_v50 }
 0x50b   :  { %v1907_v7 = vpop.f32.mrf.mxu1 }
 0x50c   :  { %v1762_v20 = vadd.f32 %v3505_v45, %v1728_v21  ;;  %v1908_v0 = vadd.f32 %v3591_v43, %v1907_v7 }
 0x50e   :  { %1993 = vst [vmem:[%s3772_s3 + $0x28] sm:$0xff] %v1908_v0  ;;  %2173 = vmatmul.msk.f32.gmra.mxu1 %vm271_vm1, %v1762_v20 }
 0x511   :  { %v1677_v54 = vpop.f32.mrf.mxu2 }
 0x512   :  { %v1729_v30 = vadd.f32 %v1677_v54, %v3283_v24 }
 0x513   :  { %v1910_v6 = vpop.f32.mrf.mxu1 }
 0x514   :  { %v1763_v34 = vadd.f32 %v3505_v45, %v1729_v30  ;;  %v1911_v2 = vadd.f32 %v3591_v43, %v1910_v6 }
 0x516   :  { %1994 = vst [vmem:[%s3772_s3 + $0x30] sm:$0xff] %v1911_v2  ;;  %2174 = vmatmul.msk.f32.gmra.mxu1 %vm271_vm1, %v1763_v34 }
 0x519   :  { %v1680_v50 = vpop.f32.mrf.mxu2 }
 0x51a   :  { %v1730_v47 = vadd.f32 %v1680_v50, %v3298_v10 }
 0x51b   :  { %v1913_v18 = vpop.f32.mrf.mxu1 }
 0x51c   :  { %v1764_v11 = vadd.f32 %v3505_v45, %v1730_v47  ;;  %v1914_v35 = vadd.f32 %v3591_v43, %v1913_v18 }
 0x51e   :  { %1995 = vst [vmem:[%s3772_s3 + $0x38] sm:$0xff] %v1914_v35  ;;  %2175 = vmatmul.msk.f32.gmra.mxu1 %vm271_vm1, %v1764_v11 }
 0x521   :  { %v1683_v24 = vpop.f32.mrf.mxu2 }
 0x522   :  { %v1731_v4 = vadd.f32 %v1683_v24, %v3313_v60 }
 0x523   :  { %v1916_v51 = vpop.f32.mrf.mxu1 }
 0x524   :  { %v1765_v63 = vadd.f32 %v3505_v45, %v1731_v4  ;;  %v1917_v55 = vadd.f32 %v3591_v43, %v1916_v51 }
 0x526   :  { %1996 = vst [vmem:[%s3772_s3 + $0x40] sm:$0xff] %v1917_v55  ;;  %2176 = vmatmul.msk.f32.gmra.mxu1 %vm271_vm1, %v1765_v63 }
 0x52b   :  { %v1919_v10 = vpop.f32.mrf.mxu1 }
 0x52c   :  { %v1920_v22 = vadd.f32 %v3591_v43, %v1919_v10 }
 0x52e   :  { %1997 = vst [vmem:[%s3772_s3 + $0x48] sm:$0xff] %v1920_v22 }
 0x533   :  { %v1922_v52 = vpop.f32.mrf.mxu1 }
 0x534   :  { %v1923_v60 = vadd.f32 %v3591_v43, %v1922_v52 }
 0x536   :  { %1998 = vst [vmem:[%s3772_s3 + $0x50] sm:$0xff] %v1923_v60 }
 0x53b   :  { %v1925_v9 = vpop.f32.mrf.mxu1 }
 0x53c   :  { %v1926_v57 = vadd.f32 %v3591_v43, %v1925_v9 }
 0x53e   :  { %1999 = vst [vmem:[%s3772_s3 + $0x58] sm:$0xff] %v1926_v57 }
 0x543   :  { %v1928_v37 = vpop.f32.mrf.mxu1 }
 0x544   :  { %v1929_v46 = vadd.f32 %v3591_v43, %v1928_v37 }
 0x546   :  { %2000 = vst [vmem:[%s3772_s3 + $0x60] sm:$0xff] %v1929_v46 }
 0x54b   :  { %v1931_v59 = vpop.f32.mrf.mxu1  ;;  %v1686_v41 = vpop.f32.mrf.mxu2 }
 0x54c   :  { %v1932_v25 = vadd.f32 %v3591_v43, %v1931_v59  ;;  %v1732_v29 = vadd.f32 %v1686_v41, %v3406_v49 }
 0x54e   :  { %2001 = vst [vmem:[%s3772_s3 + $0x68] sm:$0xff] %v1932_v25  ;;  %v1766_v38 = vadd.f32 %v3505_v45, %v1732_v29 }
 0x550   :  { %2177 = vmatmul.msk.f32.gmra.mxu1 %vm271_vm1, %v1766_v38 }
 0x553   :  { %v1934_v5 = vpop.f32.mrf.mxu1  ;;  %v1689_v33 = vpop.f32.mrf.mxu2 }
 0x554   :  { %v1935_v44 = vadd.f32 %v3591_v43, %v1934_v5  ;;  %v1733_v58 = vadd.f32 %v1689_v33, %v3422_v14 }
 0x556   :  { %2002 = vst [vmem:[%s3772_s3 + $0x70] sm:$0xff] %v1935_v44  ;;  %v1767_v49 = vadd.f32 %v3505_v45, %v1733_v58 }
 0x558   :  { %2178 = vmatmul.msk.f32.gmra.mxu1 %vm271_vm1, %v1767_v49 }
 0x55b   :  { %v1937_v27 = vpop.f32.mrf.mxu1  ;;  %v1692_v12 = vpop.f32.mrf.mxu2 }
 0x55c   :  { %v1938_v56 = vadd.f32 %v3591_v43, %v1937_v27  ;;  %v1734_v19 = vadd.f32 %v1692_v12, %v3435_v3 }
 0x55e   :  { %2003 = vst [vmem:[%s3772_s3 + $0x78] sm:$0xff] %v1938_v56  ;;  %v1768_v14 = vadd.f32 %v3505_v45, %v1734_v19 }
 0x560   :  { %2179 = vmatmul.msk.f32.gmra.mxu1 %vm271_vm1, %v1768_v14 }
 0x563   :  { %v1940_v16 = vpop.f32.mrf.mxu1  ;;  %v1695_v53 = vpop.f32.mrf.mxu2 }
 0x564   :  { %v1941_v17 = vadd.f32 %v3591_v43, %v1940_v16  ;;  %v1735_v32 = vadd.f32 %v1695_v53, %v3448_v36 }
 0x566   :  { %2004 = vst [vmem:[%s3772_s3 + $0x80] sm:$0xff] %v1941_v17  ;;  %v1769_v3 = vadd.f32 %v3505_v45, %v1735_v32 }
 0x568   :  { %2180 = vmatmul.msk.f32.gmra.mxu1 %vm271_vm1, %v1769_v3 }
 0x56b   :  { %v1943_v62 = vpop.f32.mrf.mxu1  ;;  %v1698_v13 = vpop.f32.mrf.mxu2 }
 0x56c   :  { %v1944_v15 = vadd.f32 %v3591_v43, %v1943_v62  ;;  %v1736_v26 = vadd.f32 %v1698_v13, %v3464_v1 }
 0x56e   :  { %2005 = vst [vmem:[%s3772_s3 + $0x88] sm:$0xff] %v1944_v15  ;;  %v1770_v36 = vadd.f32 %v3505_v45, %v1736_v26 }
 0x570   :  { %2181 = vmatmul.msk.f32.gmra.mxu1 %vm271_vm1, %v1770_v36 }
 0x573   :  { %v1946_v28 = vpop.f32.mrf.mxu1  ;;  %v1701_v48 = vpop.f32.mrf.mxu2 }
 0x574   :  { %v1947_v23 = vadd.f32 %v3591_v43, %v1946_v28  ;;  %v1737_v31 = vadd.f32 %v1701_v48, %v3477_v42 }
 0x576   :  { %2006 = vst [vmem:[%s3772_s3 + $0x90] sm:$0xff] %v1947_v23  ;;  %v1771_v1 = vadd.f32 %v3505_v45, %v1737_v31 }
 0x578   :  { %2182 = vmatmul.msk.f32.gmra.mxu1 %vm271_vm1, %v1771_v1 }
 0x57b   :  { %v1949_v39 = vpop.f32.mrf.mxu1 }
 0x57c   :  { %v1950_v40 = vadd.f32 %v3591_v43, %v1949_v39  ;;  %v1704_v8 = vpop.f32.mrf.mxu2 }
 0x57d   :  { %v1738_v21 = vadd.f32 %v1704_v8, %v3490_v61 }
 0x57e   :  { %2007 = vst [vmem:[%s3772_s3 + $0x98] sm:$0xff] %v1950_v40 }
 0x57f   :  { %v1772_v42 = vadd.f32 %v3505_v45, %v1738_v21 }
 0x581   :  { %2183 = vmatmul.msk.f32.gmra.mxu1 %vm271_vm1, %v1772_v42 }
 0x583   :  { %v1952_v7 = vpop.f32.mrf.mxu1 }
 0x584   :  { %v1953_v20 = vadd.f32 %v3591_v43, %v1952_v7 }
 0x586   :  { %2008 = vst [vmem:[%s3772_s3 + $0xa0] sm:$0xff] %v1953_v20 }
 0x58b   :  { %v1955_v0 = vpop.f32.mrf.mxu1 }
 0x58c   :  { %v1956_v54 = vadd.f32 %v3591_v43, %v1955_v0 }
 0x58e   :  { %2009 = vst [vmem:[%s3772_s3 + $0xa8] sm:$0xff] %v1956_v54 }
 0x593   :  { %v1958_v61 = vpop.f32.mrf.mxu1 }
 0x594   :  { %v1959_v30 = vadd.f32 %v3591_v43, %v1958_v61 }
 0x596   :  { %2010 = vst [vmem:[%s3772_s3 + $0xb0] sm:$0xff] %v1959_v30 }
 0x59b   :  { %v1961_v45 = vpop.f32.mrf.mxu1 }
 0x59c   :  { %v1962_v6 = vadd.f32 %v3591_v43, %v1961_v45 }
 0x59e   :  { %2011 = vst [vmem:[%s3772_s3 + $0xb8] sm:$0xff] %v1962_v6 }
 0x5a3   :  { %v1964_v34 = vpop.f32.mrf.mxu1 }
 0x5a4   :  { %v1965_v2 = vadd.f32 %v3591_v43, %v1964_v34 }
 0x5a6   :  { %2012 = vst [vmem:[%s3772_s3 + $0xc0] sm:$0xff] %v1965_v2 }
 0x5cd   :  { %v1967_v50 = vpop.f32.mrf.mxu1 }
 0x5ce   :  { %v1968_v47 = vadd.f32 %v3591_v43, %v1967_v50 }
 0x5d0   :  { %2013 = vst [vmem:[%s3772_s3 + $0xc8] sm:$0xff] %v1968_v47 }
 0x5d5   :  { %v1970_v18 = vpop.f32.mrf.mxu1 }
 0x5d6   :  { %v1971_v11 = vadd.f32 %v3591_v43, %v1970_v18 }
 0x5d8   :  { %2014 = vst [vmem:[%s3772_s3 + $0xd0] sm:$0xff] %v1971_v11 }
 0x5dd   :  { %v1973_v35 = vpop.f32.mrf.mxu1 }
 0x5de   :  { %v1974_v24 = vadd.f32 %v3591_v43, %v1973_v35 }
 0x5e0   :  { %2015 = vst [vmem:[%s3772_s3 + $0xd8] sm:$0xff] %v1974_v24 }
 0x5e5   :  { %v1976_v4 = vpop.f32.mrf.mxu1 }
 0x5e6   :  { %v1977_v51 = vadd.f32 %v3591_v43, %v1976_v4 }
 0x5e8   :  { %2016 = vst [vmem:[%s3772_s3 + $0xe0] sm:$0xff] %v1977_v51 }
 0x5ed   :  { %v1979_v63 = vpop.f32.mrf.mxu1 }
 0x5ee   :  { %v1980_v55 = vadd.f32 %v3591_v43, %v1979_v63 }
 0x5f0   :  { %2017 = vst [vmem:[%s3772_s3 + $0xe8] sm:$0xff] %v1980_v55 }
 0x5f5   :  { %v1982_v10 = vpop.f32.mrf.mxu1 }
 0x5f6   :  { %v1983_v22 = vadd.f32 %v3591_v43, %v1982_v10 }
 0x5f8   :  { %2018 = vst [vmem:[%s3772_s3 + $0xf0] sm:$0xff] %v1983_v22 }
 0x5fe   :  { %v1985_v52 = vpop.f32.mrf.mxu1 }
 0x5ff   :  { %v1986_v60 = vadd.f32 %v3591_v43, %v1985_v52 }
 0x601   :  { %2019 = vst [vmem:[%s3772_s3 + $0xf8] sm:$0xff] %v1986_v60 }

</bundles_post_ra>
